<compile_context>
chip_gen: v7x
topology: tpu7x:2x2x1
jax: 0.10.0
libtpu: 0.0.40
codegen_flags: <defaults>
</compile_context>

<pallas_src>
import functools
import math

import jax
import jax.numpy as jnp
import numpy as np
from jax.experimental import pallas as pl
from jax.experimental.pallas import tpu as pltpu


# ----------------------------------------------------------------------------
# In-kernel helpers (all f32 math)
# ----------------------------------------------------------------------------
def _erf_approx(x):
    # Abramowitz & Stegun 7.1.26 rational approximation, max abs err ~1.5e-7
    # (approximately f32 roundoff) -> exact-erf GELU with basic VPU/EUP ops.
    a1, a2, a3, a4, a5 = 0.254829592, -0.284496736, 1.421413741, -1.453152027, 1.061405429
    p = 0.3275911
    ax = jnp.abs(x)
    t = 1.0 / (1.0 + p * ax)
    poly = ((((a5 * t + a4) * t + a3) * t + a2) * t + a1) * t
    y = 1.0 - poly * jnp.exp(-ax * ax)
    return jnp.where(x >= 0, y, -y)


def _gelu_exact(x):
    return 0.5 * x * (1.0 + _erf_approx(x * 0.7071067811865476))


def _layernorm(z, gamma, beta):
    mu = jnp.mean(z, axis=-1, keepdims=True)
    var = jnp.mean(jnp.square(z - mu), axis=-1, keepdims=True)
    return (z - mu) * jax.lax.rsqrt(var + 1e-5) * gamma + beta


# ----------------------------------------------------------------------------
# Fused kernels
# ----------------------------------------------------------------------------
def _mha_flash_add_ln_kernel(q_ref, k_ref, v_ref,
                             wq_ref, bq_ref, wk_ref, bk_ref, wv_ref, bv_ref,
                             wo_ref, bo_ref, g_ref, beta_ref,
                             o_ref,
                             q_sc, m_sc, l_sc, acc_sc,
                             *, nhead, cdt):
    """MultiHeadAttention(q,k,v) -> +residual(q) -> LayerNorm.

    grid = (B, Sq/tq, Sk/tk); online softmax over the kv axis.
    The 1/sqrt(d_k) scale is already folded into wq/bq (wrapper side).
    """
    ki = pl.program_id(2)
    x = q_ref[0]                                  # (tq, D) f32 residual
    tq, D = x.shape
    d_k = D // nhead

    @pl.when(ki == 0)
    def _():
        # Q projection once per query tile, cached in bf16 scratch.
        Q = jnp.dot(x.astype(cdt), wq_ref[...],
                    preferred_element_type=jnp.float32) + bq_ref[...]
        q_sc[...] = jnp.transpose(Q.reshape(tq, nhead, d_k), (1, 0, 2)).astype(cdt)
        m_sc[...] = jnp.full_like(m_sc, -jnp.inf)
        l_sc[...] = jnp.zeros_like(l_sc)
        acc_sc[...] = jnp.zeros_like(acc_sc)

    kb = k_ref[0].astype(cdt)                     # (tk, D)
    vb = v_ref[0].astype(cdt)
    tk = kb.shape[0]

    K = jnp.dot(kb, wk_ref[...], preferred_element_type=jnp.float32) + bk_ref[...]
    V = jnp.dot(vb, wv_ref[...], preferred_element_type=jnp.float32) + bv_ref[...]
    Kh = jnp.transpose(K.reshape(tk, nhead, d_k), (1, 0, 2)).astype(cdt)
    Vh = jnp.transpose(V.reshape(tk, nhead, d_k), (1, 0, 2)).astype(cdt)

    # (H, tq, tk) scores for this kv tile (scale already folded into wq/bq).
    s = jnp.einsum('hqe,hke->hqk', q_sc[...], Kh,
                   preferred_element_type=jnp.float32)

    m_prev = m_sc[...]
    m_new = jnp.maximum(m_prev, jnp.max(s, axis=-1, keepdims=True))
    alpha = jnp.exp(m_prev - m_new)
    p = jnp.exp(s - m_new)
    l_sc[...] = alpha * l_sc[...] + jnp.sum(p, axis=-1, keepdims=True)
    acc_sc[...] = alpha * acc_sc[...] + jnp.einsum(
        'hqk,hke->hqe', p.astype(cdt), Vh, preferred_element_type=jnp.float32)
    m_sc[...] = m_new

    @pl.when(ki == pl.num_programs(2) - 1)
    def _():
        ctx = acc_sc[...] * pl.reciprocal(l_sc[...], approx=True)   # (H, tq, d_k)
        context = jnp.transpose(ctx, (1, 0, 2)).reshape(tq, D)
        y = jnp.dot(context.astype(cdt), wo_ref[...],
                    preferred_element_type=jnp.float32) + bo_ref[...]
        # Fused epilogue: residual add + LayerNorm.
        o_ref[0] = _layernorm(x + y, g_ref[...], beta_ref[...]).astype(o_ref.dtype)


def _ffn_add_ln_kernel(x_ref, w1_ref, b1_ref, w2_ref, b2_ref,
                       g_ref, beta_ref, o_ref, acc_ref, *, cdt):
    """FeedForward(x) -> +residual(x) -> LayerNorm on a (rows, D) tile.

    grid = (rows/tr, d_ff/tf); w2 partials accumulate in f32 VMEM scratch.
    """
    fi = pl.program_id(1)

    @pl.when(fi == 0)
    def _():
        acc_ref[...] = jnp.zeros_like(acc_ref)

    x = x_ref[...]                                               # (tr, D) f32
    h = jnp.dot(x.astype(cdt), w1_ref[...],
                preferred_element_type=jnp.float32) + b1_ref[...]
    h = _gelu_exact(h)                                           # exact-erf GELU (f32)
    acc_ref[...] += jnp.dot(h.astype(cdt), w2_ref[...],
                            preferred_element_type=jnp.float32)

    @pl.when(fi == pl.num_programs(1) - 1)
    def _():
        y = acc_ref[...] + b2_ref[...]
        o_ref[...] = _layernorm(x + y, g_ref[...], beta_ref[...]).astype(o_ref.dtype)


# ----------------------------------------------------------------------------
# Tiling helpers
# ----------------------------------------------------------------------------
def _full_spec(shape):
    zeros = (0,) * len(shape)
    return pl.BlockSpec(shape, lambda *_: zeros)


def _round_up(x, m):
    return ((x + m - 1) // m) * m


def _pick_seq_tile(s, cap):
    """Largest tile <= cap that divides s and is a multiple of 8 (else full)."""
    if s <= cap:
        return s
    t = (min(cap, s) // 8) * 8
    while t >= 8:
        if s % t == 0:
            return t
        t -= 8
    return s


def _pick_ff_tile(d_ff, cap):
    """Multiple-of-128 tile dividing d_ff (else full d_ff)."""
    if d_ff <= cap:
        return d_ff
    t = (min(cap, d_ff) // 128) * 128
    while t >= 128:
        if d_ff % t == 0:
            return t
        t -= 128
    return d_ff


_VMEM_LIMIT = 64 * 1024 * 1024   # safe scoped-VMEM limit across v5e/v6e/v7x


# ----------------------------------------------------------------------------
# Pallas wrappers
# ----------------------------------------------------------------------------
def mha_add_ln(query, key, value, p_attn, p_norm, nhead, *,
               q_tile=128, kv_tile=256, compute_dtype=jnp.bfloat16):
    B, Sq, D = query.shape
    Sk = key.shape[1]
    d_k = D // nhead
    cdt = compute_dtype
    inv_scale = 1.0 / math.sqrt(d_k)

    # Weight prep (one-time, wrapper side): fold 1/sqrt(d_k) into wq/bq,
    # cast matmul weights to the compute dtype; biases / LN params stay f32.
    wq = (p_attn["wq"] * inv_scale).astype(cdt)
    bq = p_attn["bq"] * inv_scale
    wk = p_attn["wk"].astype(cdt)
    wv = p_attn["wv"].astype(cdt)
    wo = p_attn["wo"].astype(cdt)
    bk, bv, bo = p_attn["bk"], p_attn["bv"], p_attn["bo"]

    tq = _pick_seq_tile(Sq, q_tile)
    tk = _pick_seq_tile(Sk, kv_tile)
    grid = (B, Sq // tq, Sk // tk)

    kernel = functools.partial(_mha_flash_add_ln_kernel, nhead=nhead, cdt=cdt)
    w_spec = _full_spec((D, D))
    b_spec = _full_spec((1, D))
    w_bytes = jnp.dtype(cdt).itemsize

    cost = pl.CostEstimate(
        flops=int(2 * B * (2 * Sq + 2 * Sk) * D * D + 4 * B * Sq * Sk * D),
        transcendentals=int(B * nhead * Sq * Sk),
        bytes_accessed=int(4 * (2 * B * Sq * D + 2 * B * Sk * D)
                           + 4 * D * D * w_bytes + 8 * D * 4),
    )

    return pl.pallas_call(
        kernel,
        out_shape=jax.ShapeDtypeStruct((B, Sq, D), query.dtype),
        grid=grid,
        in_specs=[
            pl.BlockSpec((1, tq, D), lambda b, qi, ki: (b, qi, 0)),
            pl.BlockSpec((1, tk, D), lambda b, qi, ki: (b, ki, 0)),
            pl.BlockSpec((1, tk, D), lambda b, qi, ki: (b, ki, 0)),
            w_spec, b_spec, w_spec, b_spec, w_spec, b_spec, w_spec, b_spec,
            b_spec, b_spec,                                  # LN gamma, beta
        ],
        out_specs=pl.BlockSpec((1, tq, D), lambda b, qi, ki: (b, qi, 0)),
        scratch_shapes=[
            pltpu.VMEM((nhead, tq, d_k), cdt),               # cached Q
            pltpu.VMEM((nhead, tq, 1), jnp.float32),         # running max m
            pltpu.VMEM((nhead, tq, 1), jnp.float32),         # running sum l
            pltpu.VMEM((nhead, tq, d_k), jnp.float32),       # context acc
        ],
        compiler_params=pltpu.CompilerParams(
            dimension_semantics=("parallel", "parallel", "arbitrary"),
            vmem_limit_bytes=_VMEM_LIMIT),
        cost_estimate=cost,
    )(query, key, value, wq, bq, wk, bk, wv, bv, wo, bo,
      p_norm["g"], p_norm["b"])


def ffn_add_ln(x, p_ffn, p_norm, *, row_tile=512, ff_tile=2048,
               compute_dtype=jnp.bfloat16):
    B, S, D = x.shape
    R = B * S
    d_ff = p_ffn["w1"].shape[1]
    cdt = compute_dtype

    w1 = p_ffn["w1"].astype(cdt)
    w2 = p_ffn["w2"].astype(cdt)
    b1, b2 = p_ffn["b1"], p_ffn["b2"]

    row_tile = max(8, (row_tile // 8) * 8)
    tr = min(row_tile, _round_up(R, 8))
    R_pad = _round_up(R, tr)
    tf = _pick_ff_tile(d_ff, ff_tile)
    grid = (R_pad // tr, d_ff // tf)

    xf = x.reshape(R, D)
    if R_pad != R:
        xf = jnp.pad(xf, ((0, R_pad - R), (0, 0)))           # padded rows are discarded

    kernel = functools.partial(_ffn_add_ln_kernel, cdt=cdt)
    w_bytes = jnp.dtype(cdt).itemsize

    cost = pl.CostEstimate(
        flops=int(4 * R * D * d_ff),
        transcendentals=int(R * d_ff),
        bytes_accessed=int(4 * 2 * R * D + 2 * D * d_ff * w_bytes
                           + 4 * (d_ff + 3 * D)),
    )

    out = pl.pallas_call(
        kernel,
        out_shape=jax.ShapeDtypeStruct((R_pad, D), x.dtype),
        grid=grid,
        in_specs=[
            pl.BlockSpec((tr, D), lambda r, f: (r, 0)),
            pl.BlockSpec((D, tf), lambda r, f: (0, f)),
            pl.BlockSpec((1, tf), lambda r, f: (0, f)),
            pl.BlockSpec((tf, D), lambda r, f: (f, 0)),
            _full_spec((1, D)),                               # b2
            _full_spec((1, D)),                               # LN gamma
            _full_spec((1, D)),                               # LN beta
        ],
        out_specs=pl.BlockSpec((tr, D), lambda r, f: (r, 0)),
        scratch_shapes=[pltpu.VMEM((tr, D), jnp.float32)],    # w2-partials acc
        compiler_params=pltpu.CompilerParams(
            dimension_semantics=("parallel", "arbitrary"),
            vmem_limit_bytes=_VMEM_LIMIT),
        cost_estimate=cost,
    )(xf, w1, b1, w2, b2, p_norm["g"], p_norm["b"])

    if R_pad != R:
        out = out[:R]
    return out.reshape(B, S, D)


def decoder_forward(tgt, memory, layers, nhead, *, q_tile=128, kv_tile=256,
                    row_tile=512, ff_tile=2048, compute_dtype=jnp.bfloat16):
    output = tgt
    for p in layers:
        # self-attn + add + norm1 (fused)
        output = mha_add_ln(output, output, output, p["self_attn"], p["norm1"],
                            nhead, q_tile=q_tile, kv_tile=kv_tile,
                            compute_dtype=compute_dtype)
        if memory is not None:
            # cross-attn + add + norm2 (fused)
            output = mha_add_ln(output, memory, memory, p["cross_attn"], p["norm2"],
                                nhead, q_tile=q_tile, kv_tile=kv_tile,
                                compute_dtype=compute_dtype)
        # FFN + add + norm3 (fused)
        output = ffn_add_ln(output, p["ffn"], p["norm3"], row_tile=row_tile,
                            ff_tile=ff_tile, compute_dtype=compute_dtype)
    return output   # Decoder(..., norm=None) -> no final norm


# ----------------------------------------------------------------------------
# Deterministic parameter init (shapes follow the PyTorch module __init__;
# linear weights stored pre-transposed as (in_features, out_features)).
# ----------------------------------------------------------------------------
def init_decoder_params(key, d_model, nhead, d_ff, num_layers):
    def linear(k, fan_in, fan_out):
        kw, kb = jax.random.split(k)
        bound = 1.0 / math.sqrt(fan_in)
        w = jax.random.uniform(kw, (fan_in, fan_out), jnp.float32, -bound, bound)
        b = jax.random.uniform(kb, (1, fan_out), jnp.float32, -bound, bound)
        return w, b

    def mha_params(k):
        out = {}
        for name, kk in zip(("q", "k", "v", "o"), jax.random.split(k, 4)):
            w, b = linear(kk, d_model, d_model)
            out["w" + name], out["b" + name] = w, b
        return out

    def ln_params():
        return {"g": jnp.ones((1, d_model), jnp.float32),
                "b": jnp.zeros((1, d_model), jnp.float32)}

    layers = []
    for l in range(num_layers):
        kl = jax.random.fold_in(key, l)
        k_sa, k_ca, k_f1, k_f2 = jax.random.split(kl, 4)
        w1, b1 = linear(k_f1, d_model, d_ff)
        w2, b2 = linear(k_f2, d_ff, d_model)
        layers.append({
            "self_attn": mha_params(k_sa),
            "cross_attn": mha_params(k_ca),
            "ffn": {"w1": w1, "b1": b1, "w2": w2, "b2": b2},
            "norm1": ln_params(), "norm2": ln_params(), "norm3": ln_params(),
        })
    return layers


# ----------------------------------------------------------------------------
# Pure-JAX f32 reference (mirrors the PyTorch forward exactly) for validation
# ----------------------------------------------------------------------------
def _mha_ref(q, k, v, p, nhead):
    B, Sq, D = q.shape
    Sk = k.shape[1]
    d_k = D // nhead
    Q = (q @ p["wq"] + p["bq"]).reshape(B, Sq, nhead, d_k).transpose(0, 2, 1, 3)
    K = (k @ p["wk"] + p["bk"]).reshape(B, Sk, nhead, d_k).transpose(0, 2, 1, 3)
    V = (v @ p["wv"] + p["bv"]).reshape(B, Sk, nhead, d_k).transpose(0, 2, 1, 3)
    s = Q @ K.transpose(0, 1, 3, 2) / math.sqrt(d_k)
    a = jax.nn.softmax(s, axis=-1)
    ctx = (a @ V).transpose(0, 2, 1, 3).reshape(B, Sq, D)
    return ctx @ p["wo"] + p["bo"]


def _add_ln_ref(x, y, p):
    z = x + y
    mu = jnp.mean(z, axis=-1, keepdims=True)
    var = jnp.mean(jnp.square(z - mu), axis=-1, keepdims=True)
    return (z - mu) / jnp.sqrt(var + 1e-5) * p["g"] + p["b"]


def _ffn_ref(x, p):
    h = jax.nn.gelu(x @ p["w1"] + p["b1"], approximate=False)
    return h @ p["w2"] + p["b2"]


def decoder_forward_ref(tgt, memory, layers, nhead):
    out = tgt
    for p in layers:
        out = _add_ln_ref(out, _mha_ref(out, out, out, p["self_attn"], nhead), p["norm1"])
        if memory is not None:
            out = _add_ln_ref(out, _mha_ref(out, memory, memory, p["cross_attn"], nhead), p["norm2"])
        out = _add_ln_ref(out, _ffn_ref(out, p["ffn"]), p["norm3"])
    return out


# ----------------------------------------------------------------------------
if __name__ == "__main__":
    d_model, nhead, d_ff, num_layers = 32, 4, 256, 2
    B, S_tgt, S_mem = 2, 16, 32

    key = jax.random.PRNGKey(0)
    kp, kt, km = jax.random.split(key, 3)
    params = init_decoder_params(kp, d_model, nhead, d_ff, num_layers)
    tgt = jax.random.normal(kt, (B, S_tgt, d_model), jnp.float32)
    memory = jax.random.normal(km, (B, S_mem, d_model), jnp.float32)

    # Small tiles so the flash-attention kv loop (multi-step online softmax),
    # the FFN d_ff accumulation, and the row padding/tiling paths are all
    # exercised at toy scale (production defaults are the larger caps).
    out = decoder_forward(tgt, memory, params, nhead,
                          q_tile=8, kv_tile=8, row_tile=24, ff_tile=128)
    out = jax.block_until_ready(out)

    ref = decoder_forward_ref(tgt, memory, params, nhead)
    assert out.shape == (B, S_tgt, d_model) and out.dtype == jnp.float32
    err = float(jnp.max(jnp.abs(out - ref)))
    # Tolerance accounts for bf16 MXU operands (f32 accumulation) across
    # 2 layers x 3 sublayers, plus the EUP approximate reciprocal in the
    # softmax and the erf rational approximation in GELU.
    if not np.allclose(np.asarray(out), np.asarray(ref), rtol=5e-2, atol=5e-2):
        raise SystemExit(f"mismatch vs reference, max abs err = {err:e}")
    print("KERNEL_OK")
</pallas_src>

<mosaic_0001>
module attributes {stable_mosaic.version = 11 : i64} {
  func.func @_mha_flash_add_ln_kernel(%arg0: i32, %arg1: i32, %arg2: i32, %arg3: memref<1x8x32xf32, #tpu.memory_space<vmem>>, %arg4: memref<1x8x32xf32, #tpu.memory_space<vmem>>, %arg5: memref<1x8x32xf32, #tpu.memory_space<vmem>>, %arg6: memref<32x32xbf16, #tpu.memory_space<vmem>>, %arg7: memref<1x32xf32, #tpu.memory_space<vmem>>, %arg8: memref<32x32xbf16, #tpu.memory_space<vmem>>, %arg9: memref<1x32xf32, #tpu.memory_space<vmem>>, %arg10: memref<32x32xbf16, #tpu.memory_space<vmem>>, %arg11: memref<1x32xf32, #tpu.memory_space<vmem>>, %arg12: memref<32x32xbf16, #tpu.memory_space<vmem>>, %arg13: memref<1x32xf32, #tpu.memory_space<vmem>>, %arg14: memref<1x32xf32, #tpu.memory_space<vmem>>, %arg15: memref<1x32xf32, #tpu.memory_space<vmem>>, %arg16: memref<1x8x32xf32, #tpu.memory_space<vmem>>, %arg17: memref<4x8x8xbf16, #tpu.memory_space<vmem>>, %arg18: memref<4x8x1xf32, #tpu.memory_space<vmem>>, %arg19: memref<4x8x1xf32, #tpu.memory_space<vmem>>, %arg20: memref<4x8x8xf32, #tpu.memory_space<vmem>>) attributes {dimension_semantics = [#tpu.dimension_semantics<parallel>, #tpu.dimension_semantics<parallel>, #tpu.dimension_semantics<arbitrary>], iteration_bounds = array<i64: 2, 2, 2>, scalar_prefetch = 0 : i64, scratch_operands = 4 : i64, tpu.core_type = #tpu.core_type<tc>, window_params = [{transform_indices = @transform_0, window_bounds = array<i64: 1, 8, 32>}, {transform_indices = @transform_1, window_bounds = array<i64: 1, 8, 32>}, {transform_indices = @transform_2, window_bounds = array<i64: 1, 8, 32>}, {pipeline_mode = #tpu.pipeline_mode<synchronous>, transform_indices = @transform_3, window_bounds = array<i64: 32, 32>}, {pipeline_mode = #tpu.pipeline_mode<synchronous>, transform_indices = @transform_4, window_bounds = array<i64: 1, 32>}, {pipeline_mode = #tpu.pipeline_mode<synchronous>, transform_indices = @transform_5, window_bounds = array<i64: 32, 32>}, {pipeline_mode = #tpu.pipeline_mode<synchronous>, transform_indices = @transform_6, window_bounds = array<i64: 1, 32>}, {pipeline_mode = #tpu.pipeline_mode<synchronous>, transform_indices = @transform_7, window_bounds = array<i64: 32, 32>}, {pipeline_mode = #tpu.pipeline_mode<synchronous>, transform_indices = @transform_8, window_bounds = array<i64: 1, 32>}, {pipeline_mode = #tpu.pipeline_mode<synchronous>, transform_indices = @transform_9, window_bounds = array<i64: 32, 32>}, {pipeline_mode = #tpu.pipeline_mode<synchronous>, transform_indices = @transform_10, window_bounds = array<i64: 1, 32>}, {pipeline_mode = #tpu.pipeline_mode<synchronous>, transform_indices = @transform_11, window_bounds = array<i64: 1, 32>}, {pipeline_mode = #tpu.pipeline_mode<synchronous>, transform_indices = @transform_12, window_bounds = array<i64: 1, 32>}, {transform_indices = @transform_13, window_bounds = array<i64: 1, 8, 32>}]} {
    %c0 = arith.constant 0 : index
    %c0_0 = arith.constant 0 : index
    %c0_1 = arith.constant 0 : index
    %0 = vector.load %arg3[%c0, %c0_0, %c0_1] : memref<1x8x32xf32, #tpu.memory_space<vmem>>, vector<1x8x32xf32>
    %1 = vector.shape_cast %0 : vector<1x8x32xf32> to vector<8x32xf32>
    %c0_i32 = arith.constant 0 : i32
    %2 = arith.cmpi eq, %arg2, %c0_i32 : i32
    %3 = arith.extui %2 : i1 to i32
    %c0_i32_2 = arith.constant 0 : i32
    %4 = arith.cmpi ne, %3, %c0_i32_2 : i32
    scf.if %4 {
      %55 = arith.truncf %1 : vector<8x32xf32> to vector<8x32xbf16>
      %c0_44 = arith.constant 0 : index
      %c0_45 = arith.constant 0 : index
      %56 = vector.load %arg6[%c0_44, %c0_45] : memref<32x32xbf16, #tpu.memory_space<vmem>>, vector<32x32xbf16>
      %cst_46 = arith.constant dense<0.000000e+00> : vector<8x32xf32>
      %57 = tpu.matmul %55, %56, %cst_46 {dimension_numbers = #tpu.dot_dimension_numbers<[1], [0], [0], [1], [0, 0, 1, 1], [], []>} : vector<8x32xbf16>, vector<32x32xbf16>, vector<8x32xf32> -> vector<8x32xf32>
      %c0_47 = arith.constant 0 : index
      %c0_48 = arith.constant 0 : index
      %58 = vector.load %arg7[%c0_47, %c0_48] : memref<1x32xf32, #tpu.memory_space<vmem>>, vector<1x32xf32>
      %59 = vector.broadcast %58 : vector<1x32xf32> to vector<8x32xf32>
      %60 = arith.addf %57, %59 : vector<8x32xf32>
      %61 = vector.shape_cast %60 : vector<8x32xf32> to vector<8x4x8xf32>
      %62 = tpu.transpose %61, [1, 0, 2] : vector<8x4x8xf32> -> vector<4x8x8xf32>
      %63 = arith.truncf %62 : vector<4x8x8xf32> to vector<4x8x8xbf16>
      %c0_49 = arith.constant 0 : index
      %c0_50 = arith.constant 0 : index
      %c0_51 = arith.constant 0 : index
      %64 = vector.load %arg17[%c0_49, %c0_50, %c0_51] : memref<4x8x8xbf16, #tpu.memory_space<vmem>>, vector<4x8x8xbf16>
      tpu.vector_store %arg17[%c0_49, %c0_50, %c0_51], %63 {strides = array<i32>} : memref<4x8x8xbf16, #tpu.memory_space<vmem>>, vector<4x8x8xbf16>,
      %cst_52 = arith.constant 0xFF800000 : f32
      %65 = vector.broadcast %cst_52 : f32 to vector<4x8x1xf32>
      %c0_53 = arith.constant 0 : index
      %c0_54 = arith.constant 0 : index
      %c0_55 = arith.constant 0 : index
      %66 = vector.load %arg18[%c0_53, %c0_54, %c0_55] : memref<4x8x1xf32, #tpu.memory_space<vmem>>, vector<4x8x1xf32>
      tpu.vector_store %arg18[%c0_53, %c0_54, %c0_55], %65 {strides = array<i32>} : memref<4x8x1xf32, #tpu.memory_space<vmem>>, vector<4x8x1xf32>,
      %cst_56 = arith.constant 0.000000e+00 : f32
      %67 = vector.broadcast %cst_56 : f32 to vector<4x8x1xf32>
      %c0_57 = arith.constant 0 : index
      %c0_58 = arith.constant 0 : index
      %c0_59 = arith.constant 0 : index
      %68 = vector.load %arg19[%c0_57, %c0_58, %c0_59] : memref<4x8x1xf32, #tpu.memory_space<vmem>>, vector<4x8x1xf32>
      tpu.vector_store %arg19[%c0_57, %c0_58, %c0_59], %67 {strides = array<i32>} : memref<4x8x1xf32, #tpu.memory_space<vmem>>, vector<4x8x1xf32>,
      %cst_60 = arith.constant 0.000000e+00 : f32
      %69 = vector.broadcast %cst_60 : f32 to vector<4x8x8xf32>
      %c0_61 = arith.constant 0 : index
      %c0_62 = arith.constant 0 : index
      %c0_63 = arith.constant 0 : index
      %70 = vector.load %arg20[%c0_61, %c0_62, %c0_63] : memref<4x8x8xf32, #tpu.memory_space<vmem>>, vector<4x8x8xf32>
      tpu.vector_store %arg20[%c0_61, %c0_62, %c0_63], %69 {strides = array<i32>} : memref<4x8x8xf32, #tpu.memory_space<vmem>>, vector<4x8x8xf32>,
    } else {
    }
    %c0_3 = arith.constant 0 : index
    %c0_4 = arith.constant 0 : index
    %c0_5 = arith.constant 0 : index
    %5 = vector.load %arg4[%c0_3, %c0_4, %c0_5] : memref<1x8x32xf32, #tpu.memory_space<vmem>>, vector<1x8x32xf32>
    %6 = vector.shape_cast %5 : vector<1x8x32xf32> to vector<8x32xf32>
    %7 = arith.truncf %6 : vector<8x32xf32> to vector<8x32xbf16>
    %c0_6 = arith.constant 0 : index
    %c0_7 = arith.constant 0 : index
    %c0_8 = arith.constant 0 : index
    %8 = vector.load %arg5[%c0_6, %c0_7, %c0_8] : memref<1x8x32xf32, #tpu.memory_space<vmem>>, vector<1x8x32xf32>
    %9 = vector.shape_cast %8 : vector<1x8x32xf32> to vector<8x32xf32>
    %10 = arith.truncf %9 : vector<8x32xf32> to vector<8x32xbf16>
    %c0_9 = arith.constant 0 : index
    %c0_10 = arith.constant 0 : index
    %11 = vector.load %arg8[%c0_9, %c0_10] : memref<32x32xbf16, #tpu.memory_space<vmem>>, vector<32x32xbf16>
    %cst = arith.constant dense<0.000000e+00> : vector<8x32xf32>
    %12 = tpu.matmul %7, %11, %cst {dimension_numbers = #tpu.dot_dimension_numbers<[1], [0], [0], [1], [0, 0, 1, 1], [], []>} : vector<8x32xbf16>, vector<32x32xbf16>, vector<8x32xf32> -> vector<8x32xf32>
    %c0_11 = arith.constant 0 : index
    %c0_12 = arith.constant 0 : index
    %13 = vector.load %arg9[%c0_11, %c0_12] : memref<1x32xf32, #tpu.memory_space<vmem>>, vector<1x32xf32>
    %14 = vector.broadcast %13 : vector<1x32xf32> to vector<8x32xf32>
    %15 = arith.addf %12, %14 : vector<8x32xf32>
    %c0_13 = arith.constant 0 : index
    %c0_14 = arith.constant 0 : index
    %16 = vector.load %arg10[%c0_13, %c0_14] : memref<32x32xbf16, #tpu.memory_space<vmem>>, vector<32x32xbf16>
    %cst_15 = arith.constant dense<0.000000e+00> : vector<8x32xf32>
    %17 = tpu.matmul %10, %16, %cst_15 {dimension_numbers = #tpu.dot_dimension_numbers<[1], [0], [0], [1], [0, 0, 1, 1], [], []>} : vector<8x32xbf16>, vector<32x32xbf16>, vector<8x32xf32> -> vector<8x32xf32>
    %c0_16 = arith.constant 0 : index
    %c0_17 = arith.constant 0 : index
    %18 = vector.load %arg11[%c0_16, %c0_17] : memref<1x32xf32, #tpu.memory_space<vmem>>, vector<1x32xf32>
    %19 = vector.broadcast %18 : vector<1x32xf32> to vector<8x32xf32>
    %20 = arith.addf %17, %19 : vector<8x32xf32>
    %21 = vector.shape_cast %15 : vector<8x32xf32> to vector<8x4x8xf32>
    %22 = tpu.transpose %21, [1, 0, 2] : vector<8x4x8xf32> -> vector<4x8x8xf32>
    %23 = arith.truncf %22 : vector<4x8x8xf32> to vector<4x8x8xbf16>
    %24 = vector.shape_cast %20 : vector<8x32xf32> to vector<8x4x8xf32>
    %25 = tpu.transpose %24, [1, 0, 2] : vector<8x4x8xf32> -> vector<4x8x8xf32>
    %26 = arith.truncf %25 : vector<4x8x8xf32> to vector<4x8x8xbf16>
    %c0_18 = arith.constant 0 : index
    %c0_19 = arith.constant 0 : index
    %c0_20 = arith.constant 0 : index
    %27 = vector.load %arg17[%c0_18, %c0_19, %c0_20] : memref<4x8x8xbf16, #tpu.memory_space<vmem>>, vector<4x8x8xbf16>
    "tpu.trace_start"() <{level = 10 : i32, message = "hqe,hke->hqk"}> : () -> ()
    %cst_21 = arith.constant dense<0.000000e+00> : vector<4x8x8xf32>
    %28 = tpu.matmul %27, %23, %cst_21 {dimension_numbers = #tpu.dot_dimension_numbers<[2], [2], [1], [1], [0, 0, 0, 1, 1, 1], [0], [0]>} : vector<4x8x8xbf16>, vector<4x8x8xbf16>, vector<4x8x8xf32> -> vector<4x8x8xf32>
    "tpu.trace_stop"() : () -> ()
    %c0_22 = arith.constant 0 : index
    %c0_23 = arith.constant 0 : index
    %c0_24 = arith.constant 0 : index
    %29 = vector.load %arg18[%c0_22, %c0_23, %c0_24] : memref<4x8x1xf32, #tpu.memory_space<vmem>>, vector<4x8x1xf32>
    %cst_25 = arith.constant dense<0xFF800000> : vector<4x8xf32>
    %30 = vector.multi_reduction <maximumf>, %28, %cst_25 [2] : vector<4x8x8xf32> to vector<4x8xf32>
    %31 = vector.shape_cast %30 : vector<4x8xf32> to vector<4x8x1xf32>
    %32 = arith.maximumf %29, %31 : vector<4x8x1xf32>
    %33 = arith.subf %29, %32 : vector<4x8x1xf32>
    %34 = math.exp %33 : vector<4x8x1xf32>
    %35 = vector.broadcast %32 : vector<4x8x1xf32> to vector<4x8x8xf32>
    %36 = arith.subf %28, %35 : vector<4x8x8xf32>
    %37 = math.exp %36 : vector<4x8x8xf32>
    %c0_26 = arith.constant 0 : index
    %c0_27 = arith.constant 0 : index
    %c0_28 = arith.constant 0 : index
    %38 = vector.load %arg19[%c0_26, %c0_27, %c0_28] : memref<4x8x1xf32, #tpu.memory_space<vmem>>, vector<4x8x1xf32>
    %39 = arith.mulf %34, %38 : vector<4x8x1xf32>
    %cst_29 = arith.constant dense<0.000000e+00> : vector<4x8xf32>
    %40 = vector.multi_reduction <add>, %37, %cst_29 [2] : vector<4x8x8xf32> to vector<4x8xf32>
    %41 = vector.shape_cast %40 : vector<4x8xf32> to vector<4x8x1xf32>
    %42 = arith.addf %39, %41 : vector<4x8x1xf32>
    %c0_30 = arith.constant 0 : index
    %c0_31 = arith.constant 0 : index
    %c0_32 = arith.constant 0 : index
    %43 = vector.load %arg19[%c0_30, %c0_31, %c0_32] : memref<4x8x1xf32, #tpu.memory_space<vmem>>, vector<4x8x1xf32>
    tpu.vector_store %arg19[%c0_30, %c0_31, %c0_32], %42 {strides = array<i32>} : memref<4x8x1xf32, #tpu.memory_space<vmem>>, vector<4x8x1xf32>,
    %c0_33 = arith.constant 0 : index
    %c0_34 = arith.constant 0 : index
    %c0_35 = arith.constant 0 : index
    %44 = vector.load %arg20[%c0_33, %c0_34, %c0_35] : memref<4x8x8xf32, #tpu.memory_space<vmem>>, vector<4x8x8xf32>
    %45 = vector.broadcast %34 : vector<4x8x1xf32> to vector<4x8x8xf32>
    %46 = arith.mulf %45, %44 : vector<4x8x8xf32>
    %47 = arith.truncf %37 : vector<4x8x8xf32> to vector<4x8x8xbf16>
    "tpu.trace_start"() <{level = 10 : i32, message = "hqk,hke->hqe"}> : () -> ()
    %cst_36 = arith.constant dense<0.000000e+00> : vector<4x8x8xf32>
    %48 = tpu.matmul %47, %26, %cst_36 {dimension_numbers = #tpu.dot_dimension_numbers<[2], [1], [1], [2], [0, 0, 0, 1, 1, 2], [0], [0]>} : vector<4x8x8xbf16>, vector<4x8x8xbf16>, vector<4x8x8xf32> -> vector<4x8x8xf32>
    "tpu.trace_stop"() : () -> ()
    %49 = arith.addf %46, %48 : vector<4x8x8xf32>
    %c0_37 = arith.constant 0 : index
    %c0_38 = arith.constant 0 : index
    %c0_39 = arith.constant 0 : index
    %50 = vector.load %arg20[%c0_37, %c0_38, %c0_39] : memref<4x8x8xf32, #tpu.memory_space<vmem>>, vector<4x8x8xf32>
    tpu.vector_store %arg20[%c0_37, %c0_38, %c0_39], %49 {strides = array<i32>} : memref<4x8x8xf32, #tpu.memory_space<vmem>>, vector<4x8x8xf32>,
    %c0_40 = arith.constant 0 : index
    %c0_41 = arith.constant 0 : index
    %c0_42 = arith.constant 0 : index
    %51 = vector.load %arg18[%c0_40, %c0_41, %c0_42] : memref<4x8x1xf32, #tpu.memory_space<vmem>>, vector<4x8x1xf32>
    tpu.vector_store %arg18[%c0_40, %c0_41, %c0_42], %32 {strides = array<i32>} : memref<4x8x1xf32, #tpu.memory_space<vmem>>, vector<4x8x1xf32>,
    %c1_i32 = arith.constant 1 : i32
    %52 = arith.cmpi eq, %arg2, %c1_i32 : i32
    %53 = arith.extui %52 : i1 to i32
    %c0_i32_43 = arith.constant 0 : i32
    %54 = arith.cmpi ne, %53, %c0_i32_43 : i32
    scf.if %54 {
      %c0_44 = arith.constant 0 : index
      %c0_45 = arith.constant 0 : index
      %c0_46 = arith.constant 0 : index
      %55 = vector.load %arg20[%c0_44, %c0_45, %c0_46] : memref<4x8x8xf32, #tpu.memory_space<vmem>>, vector<4x8x8xf32>
      %c0_47 = arith.constant 0 : index
      %c0_48 = arith.constant 0 : index
      %c0_49 = arith.constant 0 : index
      %56 = vector.load %arg19[%c0_47, %c0_48, %c0_49] : memref<4x8x1xf32, #tpu.memory_space<vmem>>, vector<4x8x1xf32>
      %57 = tpu.reciprocal %56 {approx = true} : vector<4x8x1xf32> -> vector<4x8x1xf32>
      %58 = vector.broadcast %57 : vector<4x8x1xf32> to vector<4x8x8xf32>
      %59 = arith.mulf %55, %58 : vector<4x8x8xf32>
      %60 = tpu.transpose %59, [1, 0, 2] : vector<4x8x8xf32> -> vector<8x4x8xf32>
      %61 = vector.shape_cast %60 : vector<8x4x8xf32> to vector<8x32xf32>
      %62 = arith.truncf %61 : vector<8x32xf32> to vector<8x32xbf16>
      %c0_50 = arith.constant 0 : index
      %c0_51 = arith.constant 0 : index
      %63 = vector.load %arg12[%c0_50, %c0_51] : memref<32x32xbf16, #tpu.memory_space<vmem>>, vector<32x32xbf16>
      %cst_52 = arith.constant dense<0.000000e+00> : vector<8x32xf32>
      %64 = tpu.matmul %62, %63, %cst_52 {dimension_numbers = #tpu.dot_dimension_numbers<[1], [0], [0], [1], [0, 0, 1, 1], [], []>} : vector<8x32xbf16>, vector<32x32xbf16>, vector<8x32xf32> -> vector<8x32xf32>
      %c0_53 = arith.constant 0 : index
      %c0_54 = arith.constant 0 : index
      %65 = vector.load %arg13[%c0_53, %c0_54] : memref<1x32xf32, #tpu.memory_space<vmem>>, vector<1x32xf32>
      %66 = vector.broadcast %65 : vector<1x32xf32> to vector<8x32xf32>
      %67 = arith.addf %64, %66 : vector<8x32xf32>
      %68 = arith.addf %1, %67 : vector<8x32xf32>
      %c0_55 = arith.constant 0 : index
      %c0_56 = arith.constant 0 : index
      %69 = vector.load %arg14[%c0_55, %c0_56] : memref<1x32xf32, #tpu.memory_space<vmem>>, vector<1x32xf32>
      %c0_57 = arith.constant 0 : index
      %c0_58 = arith.constant 0 : index
      %70 = vector.load %arg15[%c0_57, %c0_58] : memref<1x32xf32, #tpu.memory_space<vmem>>, vector<1x32xf32>
      %cst_59 = arith.constant dense<0.000000e+00> : vector<8xf32>
      %71 = vector.multi_reduction <add>, %68, %cst_59 [1] : vector<8x32xf32> to vector<8xf32>
      %72 = vector.shape_cast %71 : vector<8xf32> to vector<8x1xf32>
      %cst_60 = arith.constant 3.200000e+01 : f32
      %73 = vector.broadcast %cst_60 : f32 to vector<8x1xf32>
      %74 = arith.divf %72, %73 : vector<8x1xf32>
      %75 = vector.broadcast %74 : vector<8x1xf32> to vector<8x32xf32>
      %76 = arith.subf %68, %75 : vector<8x32xf32>
      %77 = arith.mulf %76, %76 : vector<8x32xf32>
      %cst_61 = arith.constant dense<0.000000e+00> : vector<8xf32>
      %78 = vector.multi_reduction <add>, %77, %cst_61 [1] : vector<8x32xf32> to vector<8xf32>
      %79 = vector.shape_cast %78 : vector<8xf32> to vector<8x1xf32>
      %cst_62 = arith.constant 3.200000e+01 : f32
      %80 = vector.broadcast %cst_62 : f32 to vector<8x1xf32>
      %81 = arith.divf %79, %80 : vector<8x1xf32>
      %82 = vector.broadcast %74 : vector<8x1xf32> to vector<8x32xf32>
      %83 = arith.subf %68, %82 : vector<8x32xf32>
      %cst_63 = arith.constant 9.99999974E-6 : f32
      %84 = vector.broadcast %cst_63 : f32 to vector<8x1xf32>
      %85 = arith.addf %81, %84 : vector<8x1xf32>
      %86 = math.rsqrt %85 : vector<8x1xf32>
      %87 = vector.broadcast %86 : vector<8x1xf32> to vector<8x32xf32>
      %88 = arith.mulf %83, %87 : vector<8x32xf32>
      %89 = vector.broadcast %69 : vector<1x32xf32> to vector<8x32xf32>
      %90 = arith.mulf %88, %89 : vector<8x32xf32>
      %91 = vector.broadcast %70 : vector<1x32xf32> to vector<8x32xf32>
      %92 = arith.addf %90, %91 : vector<8x32xf32>
      %c0_64 = arith.constant 0 : index
      %c0_65 = arith.constant 0 : index
      %c0_66 = arith.constant 0 : index
      %93 = vector.load %arg16[%c0_64, %c0_65, %c0_66] : memref<1x8x32xf32, #tpu.memory_space<vmem>>, vector<1x8x32xf32>
      %94 = vector.shape_cast %93 : vector<1x8x32xf32> to vector<8x32xf32>
      %95 = vector.shape_cast %92 : vector<8x32xf32> to vector<1x8x32xf32>
      tpu.vector_store %arg16[%c0_64, %c0_65, %c0_66], %95 {strides = array<i32>} : memref<1x8x32xf32, #tpu.memory_space<vmem>>, vector<1x8x32xf32>,
    } else {
    }
    return
  }
  func.func @transform_0(%arg0: i32, %arg1: i32, %arg2: i32) -> (i32, i32, i32) {
    %c0_i32 = arith.constant 0 : i32
    %c0_i32_0 = arith.constant 0 : i32
    return %arg0, %arg1, %c0_i32 : i32, i32, i32
  }
  func.func @transform_1(%arg0: i32, %arg1: i32, %arg2: i32) -> (i32, i32, i32) {
    %c0_i32 = arith.constant 0 : i32
    %c0_i32_0 = arith.constant 0 : i32
    return %arg0, %arg2, %c0_i32 : i32, i32, i32
  }
  func.func @transform_2(%arg0: i32, %arg1: i32, %arg2: i32) -> (i32, i32, i32) {
    %c0_i32 = arith.constant 0 : i32
    %c0_i32_0 = arith.constant 0 : i32
    return %arg0, %arg2, %c0_i32 : i32, i32, i32
  }
  func.func @transform_3(%arg0: i32, %arg1: i32, %arg2: i32) -> (i32, i32) {
    %c0_i32 = arith.constant 0 : i32
    %c0_i32_0 = arith.constant 0 : i32
    %c0_i32_1 = arith.constant 0 : i32
    return %c0_i32, %c0_i32_0 : i32, i32
  }
  func.func @transform_4(%arg0: i32, %arg1: i32, %arg2: i32) -> (i32, i32) {
    %c0_i32 = arith.constant 0 : i32
    %c0_i32_0 = arith.constant 0 : i32
    %c0_i32_1 = arith.constant 0 : i32
    return %c0_i32, %c0_i32_0 : i32, i32
  }
  func.func @transform_5(%arg0: i32, %arg1: i32, %arg2: i32) -> (i32, i32) {
    %c0_i32 = arith.constant 0 : i32
    %c0_i32_0 = arith.constant 0 : i32
    %c0_i32_1 = arith.constant 0 : i32
    return %c0_i32, %c0_i32_0 : i32, i32
  }
  func.func @transform_6(%arg0: i32, %arg1: i32, %arg2: i32) -> (i32, i32) {
    %c0_i32 = arith.constant 0 : i32
    %c0_i32_0 = arith.constant 0 : i32
    %c0_i32_1 = arith.constant 0 : i32
    return %c0_i32, %c0_i32_0 : i32, i32
  }
  func.func @transform_7(%arg0: i32, %arg1: i32, %arg2: i32) -> (i32, i32) {
    %c0_i32 = arith.constant 0 : i32
    %c0_i32_0 = arith.constant 0 : i32
    %c0_i32_1 = arith.constant 0 : i32
    return %c0_i32, %c0_i32_0 : i32, i32
  }
  func.func @transform_8(%arg0: i32, %arg1: i32, %arg2: i32) -> (i32, i32) {
    %c0_i32 = arith.constant 0 : i32
    %c0_i32_0 = arith.constant 0 : i32
    %c0_i32_1 = arith.constant 0 : i32
    return %c0_i32, %c0_i32_0 : i32, i32
  }
  func.func @transform_9(%arg0: i32, %arg1: i32, %arg2: i32) -> (i32, i32) {
    %c0_i32 = arith.constant 0 : i32
    %c0_i32_0 = arith.constant 0 : i32
    %c0_i32_1 = arith.constant 0 : i32
    return %c0_i32, %c0_i32_0 : i32, i32
  }
  func.func @transform_10(%arg0: i32, %arg1: i32, %arg2: i32) -> (i32, i32) {
    %c0_i32 = arith.constant 0 : i32
    %c0_i32_0 = arith.constant 0 : i32
    %c0_i32_1 = arith.constant 0 : i32
    return %c0_i32, %c0_i32_0 : i32, i32
  }
  func.func @transform_11(%arg0: i32, %arg1: i32, %arg2: i32) -> (i32, i32) {
    %c0_i32 = arith.constant 0 : i32
    %c0_i32_0 = arith.constant 0 : i32
    %c0_i32_1 = arith.constant 0 : i32
    return %c0_i32, %c0_i32_0 : i32, i32
  }
  func.func @transform_12(%arg0: i32, %arg1: i32, %arg2: i32) -> (i32, i32) {
    %c0_i32 = arith.constant 0 : i32
    %c0_i32_0 = arith.constant 0 : i32
    %c0_i32_1 = arith.constant 0 : i32
    return %c0_i32, %c0_i32_0 : i32, i32
  }
  func.func @transform_13(%arg0: i32, %arg1: i32, %arg2: i32) -> (i32, i32, i32) {
    %c0_i32 = arith.constant 0 : i32
    %c0_i32_0 = arith.constant 0 : i32
    return %arg0, %arg1, %c0_i32 : i32, i32, i32
  }
}

</mosaic_0001>

<bundles_post_ra>
// kernel: tpu_custom_call.1
= control target key start
LH: loop header
LB: loop body
LE: loop exit
PB: predicated region body
PF: predicated region fallthrough
CT: control target
= control target key end

     0   :  { %s4362_s0 = inlined_call_operand.hbm [shape: f32[2,16,32], index: 0, kind: input, shape index: {}]   ;;  %s4363_s1 = inlined_call_operand.hbm [shape: f32[2,16,32], index: 1, kind: input, shape index: {}]   ;;  %s4364_s2 = inlined_call_operand.hbm [shape: f32[2,16,32], index: 2, kind: input, shape index: {}]   ;;  %s4365_s3 = inlined_call_operand.hbm [shape: bf16[32,32], index: 3, kind: input, shape index: {}]   ;;  %s4366_s4 = inlined_call_operand.hbm [shape: f32[1,32], index: 4, kind: input, shape index: {}]   ;;  %s4367_s5 = inlined_call_operand.hbm [shape: bf16[32,32], index: 5, kind: input, shape index: {}]   ;;  %s4368_s6 = inlined_call_operand.hbm [shape: f32[1,32], index: 6, kind: input, shape index: {}]   ;;  %s4369_s7 = inlined_call_operand.hbm [shape: bf16[32,32], index: 7, kind: input, shape index: {}]   ;;  %s4370_s8 = inlined_call_operand.hbm [shape: f32[1,32], index: 8, kind: input, shape index: {}]   ;;  %s4371_s9 = inlined_call_operand.hbm [shape: bf16[32,32], index: 9, kind: input, shape index: {}]   ;;  %s4372_s10 = inlined_call_operand.hbm [shape: f32[1,32], index: 10, kind: input, shape index: {}]   ;;  %s4373_s11 = inlined_call_operand.hbm [shape: f32[1,32], index: 11, kind: input, shape index: {}]   ;;  %s4374_s12 = inlined_call_operand.hbm [shape: f32[1,32], index: 12, kind: input, shape index: {}]   ;;  %s4375_s13 = inlined_call_operand.hbm [shape: f32[2,16,32], index: 13, kind: output, shape index: {}]  }
   0x1   :  { %4416 = sst [smem:[#allocation53_spill]] %s4362_s0 }
   0x2   :  { %4417 = sst [smem:[#allocation54_spill]] %s4363_s1 }
   0x3   :  { %4418 = sst [smem:[#allocation55_spill]] %s4364_s2 }
   0x4   :  { %4419 = sst [smem:[#allocation56_spill]] %s4365_s3 }
   0x5   :  { %4420 = sst [smem:[#allocation57_spill]] %s4366_s4 }
   0x6   :  { %4421 = sst [smem:[#allocation58_spill]] %s4367_s5 }
   0x7   :  { %4422 = sst [smem:[#allocation59_spill]] %s4368_s6 }
   0x8   :  { %4423 = sst [smem:[#allocation60_spill]] %s4369_s7 }
   0x9   :  { %4424 = sst [smem:[#allocation61_spill]] %s4370_s8 }
   0xa   :  { %4425 = sst [smem:[#allocation62_spill]] %s4371_s9 }
   0xb   :  { %4426 = sst [smem:[#allocation63_spill]] %s4372_s10 }
   0xc   :  { %4427 = sst [smem:[#allocation64_spill]] %s4373_s11 }
   0xd   :  { %4428 = sst [smem:[#allocation65_spill]] %s4374_s12 }
   0xe   :  { %4429 = sst [smem:[#allocation66_spill]] %s4375_s13 }
   0xf   :  { %18 = vsyncpa [#allocation7], 0 }
  0x10   :  { %20 = vsyncpa [#allocation7 + $0x1], 0 }
  0x11   :  { %21 = vsyncpa [#allocation10], 0 }
  0x12   :  { %23 = vsyncpa [#allocation10 + $0x1], 0 }
  0x13   :  { %24 = vsyncpa [#allocation13], 0 }
  0x14   :  { %25 = vsyncpa [#allocation16], 0 }
  0x15   :  { %26 = vsyncpa [#allocation19], 0 }
  0x16   :  { %27 = vsyncpa [#allocation22], 0 }
  0x17   :  { %28 = vsyncpa [#allocation25], 0 }
  0x18   :  { %29 = vsyncpa [#allocation8], 0 }
  0x19   :  { %31 = vsyncpa [#allocation8 + $0x1], 0  ;;  %s3545_s25 = smov 0   ;;  %s3547_s26 = smov 0  }
  0x1a   :  { %s3549_s27 = smov 0   ;;  %s3551_s28 = smov 0  }
  0x1b   :  { %s3553_s29 = smov 0   ;;  %s3555_s30 = smov 0  }
  0x1c   :  { %s3557_s14 = smov 0   ;;  %s3559_s15 = smov 0  }
  0x1d   :  { %s3561_s16 = smov 0   ;;  %s3563_s17 = smov 0  }
  0x1e   :  { %s3565_s18 = smov 0   ;;  %s3567_s19 = smov 0  }
  0x1f   :  { %s3569_s20 = smov 0  }
  0x20 LB: > { %4430 = sst [smem:[#allocation36_spill]] %s3391_s26  ;;  %s3611_s21 = sadd.s32 4294967295, %s3435_s20   ;;  %s3435_s20 = sphi %s3569_s20, %s37_s20   ;;  %s3431_s19 = sphi %s3567_s19, %s4537_s19   ;;  %s3427_s18 = sphi %s3565_s18, %s4528_s18   ;;  %s3423_s17 = sphi %s3563_s17, %s4536_s17   ;;  %s3419_s16 = sphi %s3561_s16, %s4535_s16   ;;  %s3415_s15 = sphi %s3559_s15, %s4527_s15   ;;  %s3411_s14 = sphi %s3557_s14, %s4534_s14   ;;  %s3407_s30 = sphi %s3555_s30, %s4533_s30   ;;  %s3403_s29 = sphi %s3553_s29, %s4525_s29   ;;  %s3399_s28 = sphi %s3551_s28, %s4532_s28   ;;  %s3395_s27 = sphi %s3549_s27, %s4531_s27   ;;  %s3391_s26 = sphi %s3547_s26, %s4530_s26   ;;  %s3387_s25 = sphi %s3545_s25, %s4523_s25  }
  0x21   : > { %4431 = sst [smem:[#allocation37_spill]] %s3399_s28  ;;  %p2427_p0 = scmp.ge.s32.totalorder %s3435_s20, 1 }
  0x22   : > { %4432 = sst [smem:[#allocation38_spill]] %s3403_s29  ;;  %p4386_p1 = scmp.eq.s32.totalorder %s3611_s21, 0 }
  0x23   : > { %4433 = sst [smem:[#allocation39_spill]] %s3407_s30  ;;  %p383_p2 = scmp.lt.s32.totalorder %s3435_s20, 9 }
  0x24   : > { %4434 = sst [smem:[#allocation40_spill]] %s3411_s14  ;;  %s3437_s23 = smov [#allocation12]  }
  0x25   : > { %4435 = sst [smem:[#allocation41_spill]] %s3415_s15  ;;  %p3616_p3 = pnand %p2427_p0, %p383_p2 }
  0x26   : > { %4436 = sst [smem:[#allocation42_spill]] %s3419_s16  ;;  %s395_s24 = sshll.u32 %s3437_s23, 4  ;;  %s3620_s24 = int_to_ptr.vmem [resolvable:$true] %s395_s24 }
  0x27   : > { %4437 = sst [smem:[#allocation43_spill]] %s3427_s18  ;;  %p2660_p4 = pneg %p3616_p3 }
  0x28   : > { %4438 = sst [smem:[#allocation44_spill]] %s3611_s21  ;;  %s3438_s15 = smov [#allocation15]  }
  0x29   : > { %s4439_s22 = scalar_select %p3616_p3, 1, 0 }
  0x2a   : > { %p3626_p5 = pnand %p2660_p4, %p4386_p1  ;;  %s419_s16 = sshll.u32 %s3438_s15, 4  ;;  %s3630_s16 = int_to_ptr.vmem [resolvable:$true] %s419_s16 }
  0x2b   : > { %4440 = sst [smem:[#allocation45_spill]] %s4439_s22  ;;  %s3439_s14 = smov [#allocation18]  }
  0x2c   : > { %s4441_s13 = scalar_select %p3626_p5, 1, 0 }
  0x2d   : > { %s3632_s2 = sshll.u32 %s3439_s14, 4  ;;  %s4442_s3 = sld [smem:[#allocation56_spill]]  ;;  %s444_s2 = int_to_ptr.vmem [resolvable:$true] %s3632_s2 }
  0x2e   : > { %p3642_p7 = pneg %p3626_p5 }
  0x33   : > { %s2903_s23 = scalar_lea.hbm %s4442_s3, 256 }
  0x34   : > { %p2904_p6 = scmp.ne.s32.totalorder %s4442_s3, %s2903_s23  ;;  %p2910_p10 = scmp.lt.u32.totalorder %s2903_s23, %s4442_s3 }
  0x36   : > { %p2906_p8 = pnand %p3642_p7, %p2904_p6 }
  0x38   : > { %p2907_p9 = pneg %p2906_p8 }
  0x3a   : > { %p2912_p11 = pnand %p2910_p10, %p2907_p9 }
  0x3c   : > { %2915 = shalt.err (!%p2912_p11)
}
  0x3d   : > { %s2916_s0 = scalar_lea.vmem %s3620_s24, 256  ;;  %p2924_p2 = scmp.lt.s32.totalorder %s3620_s24, %s3620_s24 }
  0x3e   : > { %p2917_p12 = scmp.ne.s32.totalorder %s3620_s24, %s2916_s0  ;;  %p2925_p4 = scmp.lt.s32.totalorder %s2916_s0, %s2916_s0 }
  0x40   : > { %p2919_p13 = pnand %p2917_p12, %p3642_p7  ;;  %p2926_p6 = por %p2925_p4, %p2924_p2 }
  0x42   : > { %p2920_p0 = pneg %p2919_p13 }
  0x44   : > { %p2927_p8 = pnand %p2926_p6, %p2920_p0 }
  0x46   : > { %2930 = shalt.err (!%p2927_p8)
}
  0x47   : > { %s3440_s28 = smov 64   ;;  %s3441_s29 = smov 4  }
  0x48   : > { %2663 = dma.hbm_to_vmem [thread:$0]  (!%p3626_p5), %s4442_s3, 256, %s3620_s24, [#allocation13], %s3440_s28, %s3440_s28, %s3441_s29  }
  0x49   : > { %s4444_s5 = sld [smem:[#allocation58_spill]] }
  0x4f   : > { %s2931_s0 = scalar_lea.hbm %s4444_s5, 256 }
  0x50   : > { %p2932_p9 = scmp.ne.s32.totalorder %s4444_s5, %s2931_s0  ;;  %p2938_p12 = scmp.lt.u32.totalorder %s2931_s0, %s4444_s5 }
  0x52   : > { %p2934_p10 = pnand %p2932_p9, %p3642_p7 }
  0x54   : > { %p2935_p11 = pneg %p2934_p10 }
  0x56   : > { %p2940_p13 = pnand %p2938_p12, %p2935_p11 }
  0x58   : > { %2943 = shalt.err (!%p2940_p13)
}
  0x59   : > { %s2944_s24 = scalar_lea.vmem %s3630_s16, 256  ;;  %p2952_p6 = scmp.lt.s32.totalorder %s3630_s16, %s3630_s16 }
  0x5a   : > { %p2945_p0 = scmp.ne.s32.totalorder %s3630_s16, %s2944_s24  ;;  %p2953_p8 = scmp.lt.s32.totalorder %s2944_s24, %s2944_s24 }
  0x5c   : > { %p2947_p2 = pnand %p2945_p0, %p3642_p7  ;;  %p2954_p9 = por %p2953_p8, %p2952_p6 }
  0x5e   : > { %p2948_p4 = pneg %p2947_p2 }
  0x60   : > { %p2955_p10 = pnand %p2954_p9, %p2948_p4 }
  0x62   : > { %2958 = shalt.err (!%p2955_p10)
}
  0x63   : > { %2669 = dma.hbm_to_vmem [thread:$0]  (!%p3626_p5), %s4444_s5, 256, %s3630_s16, [#allocation16], %s3440_s28, %s3440_s28, %s3441_s29  }
  0x64   : > { %s4445_s7 = sld [smem:[#allocation60_spill]] }
  0x6a   : > { %s2959_s22 = scalar_lea.hbm %s4445_s7, 256 }
  0x6b   : > { %p2960_p11 = scmp.ne.s32.totalorder %s4445_s7, %s2959_s22  ;;  %p2966_p0 = scmp.lt.u32.totalorder %s2959_s22, %s4445_s7 }
  0x6d   : > { %p2962_p12 = pnand %p2960_p11, %p3642_p7 }
  0x6f   : > { %p2963_p13 = pneg %p2962_p12 }
  0x71   : > { %p2968_p2 = pnand %p2966_p0, %p2963_p13 }
  0x73   : > { %2971 = shalt.err (!%p2968_p2)
}
  0x74   : > { %s2972_s24 = scalar_lea.vmem %s444_s2, 256  ;;  %p2980_p9 = scmp.lt.s32.totalorder %s444_s2, %s444_s2 }
  0x75   : > { %p2973_p4 = scmp.ne.s32.totalorder %s444_s2, %s2972_s24  ;;  %p2981_p10 = scmp.lt.s32.totalorder %s2972_s24, %s2972_s24 }
  0x77   : > { %p2975_p6 = pnand %p2973_p4, %p3642_p7  ;;  %p2982_p1 = por %p2981_p10, %p2980_p9 }
  0x79   : > { %p2976_p8 = pneg %p2975_p6 }
  0x7b   : > { %p2983_p3 = pnand %p2982_p1, %p2976_p8 }
  0x7d   : > { %2986 = shalt.err (!%p2983_p3)
}
  0x7e   : > { %2675 = dma.hbm_to_vmem [thread:$0]  (!%p3626_p5), %s4445_s7, 256, %s444_s2, [#allocation19], %s3440_s28, %s3440_s28, %s3441_s29  }
  0x7f   : > { %s3442_s10 = smov [#allocation21]   ;;  %s3443_s18 = smov [#allocation24]  }
  0x80   : > { %s467_s12 = sshll.u32 %s3442_s10, 4  ;;  %s492_s22 = sshll.u32 %s3443_s18, 4  ;;  %s468_s12 = int_to_ptr.vmem [resolvable:$true] %s467_s12  ;;  %s493_s22 = int_to_ptr.vmem [resolvable:$true] %s492_s22 }
  0x81   : > { %s4446_s9 = sld [smem:[#allocation62_spill]] }
  0x87   : > { %s2987_s14 = scalar_lea.hbm %s4446_s9, 256 }
  0x88   : > { %p2988_p1 = scmp.ne.s32.totalorder %s4446_s9, %s2987_s14  ;;  %p2994_p12 = scmp.lt.u32.totalorder %s2987_s14, %s4446_s9 }
  0x8a   : > { %p2990_p3 = pnand %p2988_p1, %p3642_p7 }
  0x8c   : > { %p2991_p11 = pneg %p2990_p3 }
  0x8e   : > { %p2996_p13 = pnand %p2994_p12, %p2991_p11 }
  0x90   : > { %2999 = shalt.err (!%p2996_p13)
}
  0x91   : > { %s3000_s2 = scalar_lea.vmem %s468_s12, 256  ;;  %p3008_p6 = scmp.lt.s32.totalorder %s468_s12, %s468_s12 }
  0x92   : > { %p3001_p0 = scmp.ne.s32.totalorder %s468_s12, %s3000_s2  ;;  %p3009_p8 = scmp.lt.s32.totalorder %s3000_s2, %s3000_s2 }
  0x94   : > { %p3003_p2 = pnand %p3001_p0, %p3642_p7  ;;  %p3010_p9 = por %p3009_p8, %p3008_p6 }
  0x96   : > { %p3004_p4 = pneg %p3003_p2 }
  0x98   : > { %p3011_p10 = pnand %p3010_p9, %p3004_p4 }
  0x9a   : > { %3014 = shalt.err (!%p3011_p10)
}
  0x9b   : > { %2681 = dma.hbm_to_vmem [thread:$0]  (!%p3626_p5), %s4446_s9, 256, %s468_s12, [#allocation22], %s3440_s28, %s3440_s28, %s3441_s29  }
  0x9c   : > { %s4447_s11 = sld [smem:[#allocation64_spill]] }
  0xa2   : > { %s3015_s23 = scalar_lea.hbm %s4447_s11, 16 }
  0xa3   : > { %p3016_p1 = scmp.ne.s32.totalorder %s4447_s11, %s3015_s23  ;;  %p3022_p12 = scmp.lt.u32.totalorder %s3015_s23, %s4447_s11 }
  0xa5   : > { %p3018_p3 = pnand %p3016_p1, %p3642_p7 }
  0xa7   : > { %p3019_p11 = pneg %p3018_p3 }
  0xa9   : > { %p3024_p13 = pnand %p3022_p12, %p3019_p11 }
  0xab   : > { %3027 = shalt.err (!%p3024_p13)
}
  0xac   : > { %s3028_s16 = scalar_lea.vmem %s493_s22, 16  ;;  %s3035_s28 = scalar_lea.vmem %s493_s22, 32 }
  0xad   : > { %p3029_p0 = scmp.ne.s32.totalorder %s493_s22, %s3028_s16  ;;  %p3036_p6 = scmp.lt.s32.totalorder %s493_s22, %s493_s22 }
  0xae   : > { %p3037_p8 = scmp.lt.s32.totalorder %s3035_s28, %s3028_s16 }
  0xaf   : > { %p3031_p2 = pnand %p3029_p0, %p3642_p7 }
  0xb0   : > { %p3038_p9 = por %p3037_p8, %p3036_p6 }
  0xb1   : > { %p3032_p4 = pneg %p3031_p2 }
  0xb3   : > { %p3039_p10 = pnand %p3038_p9, %p3032_p4 }
  0xb5   : > { %3042 = shalt.err (!%p3039_p10)
}
  0xb6   : > { %2687 = dma.hbm_to_vmem [thread:$0]  (!%p3626_p5), %s4447_s11, 16, %s493_s22, [#allocation25]  }
  0xb7   : > { %s49_s2 = sadd.s32 1, %s3423_s17  ;;  %p4391_p3 = scmp.eq.s32.totalorder %s3435_s20, 0 }
  0xb8   : > { %p3754_p1 = scmp.ge.s32.totalorder %s49_s2, 2  ;;  %p100_p11 = scmp.ne.s32.totalorder %s3395_s27, %s3391_s26 }
  0xb9   : > { %p106_p12 = scmp.ne.s32.totalorder %s3391_s26, %s3387_s25  ;;  %p4390_p13 = scmp.lt.s32.totalorder %s3435_s20, 8 }
  0xba   : > { %s4448_s3 = scalar_select %p3754_p1, 1, 0 }
  0xbb   : > { %s4539_s2 = smov (%p3754_p1, %s49_s2), 0  ;;  %p102_p0 = por %p100_p11, %p4391_p3 }
  0xbc   : > { %p4449_p2 = scmp.eq.s32.totalorder %s3611_s21, 0  ;;  %s4388_s18 = sshll.u32 %s3431_s19, 1 }
  0xbd   : > { %s534_s23 = sand.u32 1, %s3435_s20   ;;  %s536_s15 = sand.u32 1, %s3395_s27  }
  0xbe   : > { %p3774_p4 = por %p106_p12, %p4449_p2  ;;  %s3781_s14 = sshll.u32 %s536_s15, 3 }
  0xbf   : > { %s3786_s0 = sadd.s32 %s3423_s17, %s4388_s18  ;;  %s4452_s1 = sld [smem:[#allocation54_spill]] }
  0xc0   : > { %s4450_s22 = scalar_select %p3774_p4, 1, 0 }
  0xc1   : > { %s4389_s25 = sshll.u32 %s3786_s0, 7  ;;  %s538_s29 = scalar_lea.vmem [#allocation9], %s3781_s14 }
  0xc2   : > { %4451 = sst [smem:[#allocation46_spill]] %s4450_s22  ;;  %s547_s12 = sshll.u32 %s538_s29, 4  ;;  %s3797_s12 = int_to_ptr.vmem [resolvable:$true] %s547_s12 }
  0xc3   : > { %p3801_p6 = pnand %p4390_p13, %p102_p0  ;;  %s3807_s18 = scalar_lea.sflag [#allocation10], %s534_s23 }
  0xc4   : > { %4454 = sst [smem:[#allocation47_spill]] %s3807_s18 }
  0xc5   : > { %s3794_s28 = scalar_lea.hbm %s4452_s1, %s4389_s25  ;;  %p4396_p9 = pneg %p3801_p6 }
  0xc6   : > { %s4453_s15 = scalar_select %p3801_p6, 1, 0 }
  0xc7   : > { %s3043_s24 = scalar_lea.hbm %s3794_s28, 128  ;;  %s3048_s25 = scalar_lea.hbm %s4452_s1, 512 }
  0xc8   : > { %p3044_p8 = scmp.ne.s32.totalorder %s3794_s28, %s3043_s24  ;;  %p3049_p12 = scmp.lt.u32.totalorder %s3794_s28, %s4452_s1 }
  0xc9   : > { %p3050_p0 = scmp.lt.u32.totalorder %s3048_s25, %s3043_s24  ;;  %p3052_p13 = scmp.lt.u32.totalorder %s3043_s24, %s3794_s28 }
  0xca   : > { %p3046_p10 = pnand %p4396_p9, %p3044_p8 }
  0xcb   : > { %p3051_p2 = por %p3050_p0, %p3049_p12 }
  0xcc   : > { %p3047_p11 = pneg %p3046_p10 }
  0xcd   : > { %p3053_p3 = por %p3052_p13, %p3051_p2 }
  0xcf   : > { %p3054_p4 = pnand %p3053_p3, %p3047_p11 }
  0xd1   : > { %3057 = shalt.err (!%p3054_p4)
}
  0xd2   : > { %s3058_s23 = scalar_lea.vmem %s3797_s12, 128  ;;  %s3444_s16 = smov [#allocation9]  }
  0xd3   : > { %p3059_p8 = scmp.ne.s32.totalorder %s3797_s12, %s3058_s23  ;;  %s3063_s29 = sshll.u32 %s3444_s16, 4  ;;  %s3064_s29 = int_to_ptr.vmem [resolvable:$false] %s3063_s29 }
  0xd4   : > { %s3065_s5 = scalar_lea.vmem %s3064_s29, 256  ;;  %p3066_p5 = scmp.lt.s32.totalorder %s3797_s12, %s3064_s29 }
  0xd5   : > { %p3061_p10 = pnand %p3059_p8, %p4396_p9  ;;  %p3067_p12 = scmp.lt.s32.totalorder %s3065_s5, %s3058_s23 }
  0xd7   : > { %p3062_p1 = pneg %p3061_p10  ;;  %p3068_p0 = por %p3067_p12, %p3066_p5 }
  0xd9   : > { %p3069_p13 = pnand %p3068_p0, %p3062_p1 }
  0xdb   : > { %3072 = shalt.err (!%p3069_p13)
}
  0xdc   : > { %2697 = dma.hbm_to_vmem [thread:$0]  (!%p3801_p6), %s3794_s28, 128, %s3797_s12, %s3807_s18  }
  0xdd   : > { %s3445_s8 = smov [#allocation14]   ;;  %s3446_s24 = smov [#allocation17]  }
  0xde   : > { %s409_s25 = sshll.u32 %s3445_s8, 4  ;;  %s433_s10 = sshll.u32 %s3446_s24, 4  ;;  %s410_s25 = int_to_ptr.vmem [resolvable:$true] %s409_s25  ;;  %s434_s10 = int_to_ptr.vmem [resolvable:$true] %s433_s10 }
  0xdf   : > { %s4455_s4 = sld [smem:[#allocation57_spill]] }
  0xe5   : > { %s3073_s29 = scalar_lea.hbm %s4455_s4, 16 }
  0xe6   : > { %p3074_p5 = scmp.ne.s32.totalorder %s4455_s4, %s3073_s29  ;;  %p3080_p4 = scmp.lt.u32.totalorder %s3073_s29, %s4455_s4 }
  0xe8   : > { %p3076_p1 = pnand %p3074_p5, %p3642_p7 }
  0xea   : > { %p3077_p3 = pneg %p3076_p1 }
  0xec   : > { %p3082_p11 = pnand %p3080_p4, %p3077_p3 }
  0xee   : > { %3085 = shalt.err (!%p3082_p11)
}
  0xef   : > { %s3086_s28 = scalar_lea.vmem %s410_s25, 16  ;;  %s3093_s1 = scalar_lea.vmem %s410_s25, 32 }
  0xf0   : > { %p3087_p2 = scmp.ne.s32.totalorder %s410_s25, %s3086_s28  ;;  %p3094_p12 = scmp.lt.s32.totalorder %s410_s25, %s410_s25 }
  0xf1   : > { %p3095_p0 = scmp.lt.s32.totalorder %s3093_s1, %s3086_s28 }
  0xf2   : > { %p3089_p8 = pnand %p3087_p2, %p3642_p7 }
  0xf3   : > { %p3096_p13 = por %p3095_p0, %p3094_p12 }
  0xf4   : > { %p3090_p10 = pneg %p3089_p8 }
  0xf6   : > { %p3097_p9 = pnand %p3096_p13, %p3090_p10 }
  0xf8   : > { %3100 = shalt.err (!%p3097_p9)
}
  0xf9   : > { %p4456_p5 = scmp.ne.s32.totalorder %s4441_s13, 0  ;;  %s4457_s6 = sld [smem:[#allocation59_spill]] }
  0xfb   : > { %2666 = dma.hbm_to_vmem [thread:$0]  (!%p4456_p5), %s4455_s4, 16, %s410_s25, [#allocation13]  }
  0xff   : > { %s3101_s24 = scalar_lea.hbm %s4457_s6, 16 }
 0x100   : > { %p3102_p1 = scmp.ne.s32.totalorder %s4457_s6, %s3101_s24  ;;  %p3108_p9 = scmp.lt.u32.totalorder %s3101_s24, %s4457_s6 }
 0x102   : > { %p3104_p3 = pnand %p3102_p1, %p3642_p7 }
 0x104   : > { %p3105_p4 = pneg %p3104_p3 }
 0x106   : > { %p3110_p11 = pnand %p3108_p9, %p3105_p4 }
 0x108   : > { %3113 = shalt.err (!%p3110_p11)
}
 0x109   : > { %s3114_s28 = scalar_lea.vmem %s434_s10, 16  ;;  %s3121_s25 = scalar_lea.vmem %s434_s10, 32 }
 0x10a   : > { %p3115_p2 = scmp.ne.s32.totalorder %s434_s10, %s3114_s28  ;;  %p3122_p12 = scmp.lt.s32.totalorder %s434_s10, %s434_s10 }
 0x10b   : > { %p3123_p0 = scmp.lt.s32.totalorder %s3121_s25, %s3114_s28 }
 0x10c   : > { %p3117_p8 = pnand %p3115_p2, %p3642_p7 }
 0x10d   : > { %p3124_p13 = por %p3123_p0, %p3122_p12 }
 0x10e   : > { %p3118_p10 = pneg %p3117_p8 }
 0x110   : > { %p3125_p6 = pnand %p3124_p13, %p3118_p10 }
 0x112   : > { %3128 = shalt.err (!%p3125_p6)
}
 0x113   : > { %2672 = dma.hbm_to_vmem [thread:$0]  (!%p4456_p5), %s4457_s6, 16, %s434_s10, [#allocation16]  }
 0x114   : > { %s3447_s8 = smov [#allocation20]   ;;  %s3448_s9 = smov [#allocation23]  }
 0x115   : > { %s457_s7 = sshll.u32 %s3447_s8, 4  ;;  %s481_s24 = sshll.u32 %s3448_s9, 4  ;;  %s458_s7 = int_to_ptr.vmem [resolvable:$true] %s457_s7  ;;  %s482_s24 = int_to_ptr.vmem [resolvable:$true] %s481_s24 }
 0x116   : > { %s4458_s23 = sld [smem:[#allocation61_spill]] }
 0x11c   : > { %s3129_s5 = scalar_lea.hbm %s4458_s23, 16 }
 0x11d   : > { %p3130_p6 = scmp.ne.s32.totalorder %s4458_s23, %s3129_s5  ;;  %p3136_p4 = scmp.lt.u32.totalorder %s3129_s5, %s4458_s23 }
 0x11f   : > { %p3132_p1 = pnand %p3130_p6, %p3642_p7 }
 0x121   : > { %p3133_p3 = pneg %p3132_p1 }
 0x123   : > { %p3138_p9 = pnand %p3136_p4, %p3133_p3 }
 0x125   : > { %3141 = shalt.err (!%p3138_p9)
}
 0x126   : > { %s3142_s10 = scalar_lea.vmem %s458_s7, 16  ;;  %s3149_s12 = scalar_lea.vmem %s458_s7, 32 }
 0x127   : > { %p3143_p11 = scmp.ne.s32.totalorder %s458_s7, %s3142_s10  ;;  %p3150_p10 = scmp.lt.s32.totalorder %s458_s7, %s458_s7 }
 0x128   : > { %p3151_p12 = scmp.lt.s32.totalorder %s3149_s12, %s3142_s10 }
 0x129   : > { %p3145_p2 = pnand %p3143_p11, %p3642_p7 }
 0x12a   : > { %p3152_p0 = por %p3151_p12, %p3150_p10 }
 0x12b   : > { %p3146_p8 = pneg %p3145_p2 }
 0x12d   : > { %p3153_p13 = pnand %p3152_p0, %p3146_p8 }
 0x12f   : > { %3156 = shalt.err (!%p3153_p13)
}
 0x130   : > { %2678 = dma.hbm_to_vmem [thread:$0]  (!%p4456_p5), %s4458_s23, 16, %s458_s7, [#allocation19]  }
 0x131   : > { %s4459_s29 = sld [smem:[#allocation63_spill]] }
 0x137   : > { %s4460_s5 = smov %s4459_s29  ;;  %s3157_s28 = scalar_lea.hbm %s4459_s29, 16 }
 0x138   : > { %p3158_p6 = scmp.ne.s32.totalorder %s4460_s5, %s3157_s28  ;;  %p3164_p4 = scmp.lt.u32.totalorder %s3157_s28, %s4460_s5 }
 0x13a   : > { %p3160_p1 = pnand %p3158_p6, %p3642_p7 }
 0x13c   : > { %p3161_p3 = pneg %p3160_p1 }
 0x13e   : > { %p3166_p9 = pnand %p3164_p4, %p3161_p3 }
 0x140   : > { %3169 = shalt.err (!%p3166_p9)
}
 0x141   : > { %s3170_s8 = scalar_lea.vmem %s482_s24, 16  ;;  %s3177_s7 = scalar_lea.vmem %s482_s24, 32 }
 0x142   : > { %p3171_p11 = scmp.ne.s32.totalorder %s482_s24, %s3170_s8  ;;  %p3178_p10 = scmp.lt.s32.totalorder %s482_s24, %s482_s24 }
 0x143   : > { %p3179_p12 = scmp.lt.s32.totalorder %s3177_s7, %s3170_s8 }
 0x144   : > { %p3173_p2 = pnand %p3171_p11, %p3642_p7 }
 0x145   : > { %p3180_p0 = por %p3179_p12, %p3178_p10 }
 0x146   : > { %p3174_p8 = pneg %p3173_p2 }
 0x148   : > { %p3181_p13 = pnand %p3180_p0, %p3174_p8 }
 0x14a   : > { %3184 = shalt.err (!%p3181_p13)
}
 0x14b   : > { %2684 = dma.hbm_to_vmem [thread:$0]  (!%p4456_p5), %s4460_s5, 16, %s482_s24, [#allocation22]  }
 0x14c   : > { %s3449_s16 = smov [#allocation26]   ;;  %s4461_s1 = sld [smem:[#allocation65_spill]] }
 0x14d   : > { %s503_s29 = sshll.u32 %s3449_s16, 4  ;;  %s504_s29 = int_to_ptr.vmem [resolvable:$true] %s503_s29 }
 0x152   : > { %s3185_s10 = scalar_lea.hbm %s4461_s1, 16 }
 0x153   : > { %p3186_p6 = scmp.ne.s32.totalorder %s4461_s1, %s3185_s10  ;;  %p3192_p4 = scmp.lt.u32.totalorder %s3185_s10, %s4461_s1 }
 0x155   : > { %p3188_p1 = pnand %p3186_p6, %p3642_p7 }
 0x157   : > { %p3189_p3 = pneg %p3188_p1 }
 0x159   : > { %p3194_p9 = pnand %p3192_p4, %p3189_p3 }
 0x15b   : > { %3197 = shalt.err (!%p3194_p9)
}
 0x15c   : > { %s3198_s24 = scalar_lea.vmem %s504_s29, 16  ;;  %s3205_s9 = scalar_lea.vmem %s504_s29, 32 }
 0x15d   : > { %p3199_p11 = scmp.ne.s32.totalorder %s504_s29, %s3198_s24  ;;  %p3206_p10 = scmp.lt.s32.totalorder %s504_s29, %s504_s29 }
 0x15e   : > { %p3207_p12 = scmp.lt.s32.totalorder %s3205_s9, %s3198_s24 }
 0x15f   : > { %p3201_p2 = pnand %p3199_p11, %p3642_p7 }
 0x160   : > { %p3208_p0 = por %p3207_p12, %p3206_p10 }
 0x161   : > { %p3202_p8 = pneg %p3201_p2 }
 0x163   : > { %p3209_p13 = pnand %p3208_p0, %p3202_p8 }
 0x165   : > { %3212 = shalt.err (!%p3209_p13)
}
 0x166   : > { %s4462_s16 = sld [smem:[#allocation43_spill]]  ;;  %s4463_s28 = sld [smem:[#allocation39_spill]] }
 0x167   : > { %s4464_s25 = sld [smem:[#allocation38_spill]]  ;;  %s4465_s30 = sld [smem:[#allocation37_spill]] }
 0x168   : > { %2690 = dma.hbm_to_vmem [thread:$0]  (!%p4456_p5), %s4461_s1, 16, %s504_s29, [#allocation25]  }
 0x169   : > { %s2426_s13 = sadd.s32 4294967294, %s3435_s20   ;;  %p4466_p7 = scmp.ne.s32.totalorder %s4448_s3, 0 }
 0x16a   : > { %p4467_p4 = scmp.eq.s32.totalorder %s3435_s20, 0  ;;  %p370_p11 = scmp.eq.s32.totalorder %s3611_s21, 7 }
 0x16b   : > { %s4470_s29 = sadd.s32 1, %s3431_s19  ;;  %p4471_p5 = scmp.eq.s32.totalorder %s3611_s21, 0 }
 0x16c   : > { %s52_s10 = sadd.s32 1, %s4462_s16  ;;  %s65_s12 = sadd.s32 1, %s4463_s28 }
 0x16d   : > { %s4541_s10 = smov (!%p4466_p7, %s52_s10), %s4462_s16  ;;  %p72_p6 = scmp.ne.s32.totalorder %s4463_s28, %s4464_s25 }
 0x16e   : > { %p54_p1 = scmp.ge.s32.totalorder %s4541_s10, 2  ;;  %p78_p3 = scmp.ne.s32.totalorder %s4464_s25, %s4465_s30 }
 0x16f   : > { %p3937_p9 = por %p4467_p4, %p72_p6  ;;  %p3955_p10 = por %p370_p11, %p72_p6 }
 0x170   : > { %s4543_s10 = smov (%p54_p1, %s4541_s10), 0  ;;  %s4545_s29 = smov (!%p54_p1, %s4470_s29), %s3431_s19 }
 0x171   : > { %4469 = sst [smem:[#allocation48_spill]] %s4543_s10  ;;  %s61_s3 = ssub.s32 %s4462_s16, %s4543_s10 }
 0x172   : > { %p3951_p2 = por %p4471_p5, %p78_p3  ;;  %p58_p8 = scmp.ge.s32.totalorder %s4545_s29, 2 }
 0x173   : > { %s4474_s24 = scalar_select %p3955_p10, 1, 0 }
 0x174   : > { %s4472_s7 = scalar_select %p3951_p2, 1, 0 }
 0x175   : > { %4475 = sst [smem:[#allocation50_spill]] %s4474_s24  ;;  %p376_p12 = scmp.eq.s32.totalorder %s2426_s13, 7 }
 0x176   : > { %4473 = sst [smem:[#allocation49_spill]] %s4472_s7  ;;  %s514_s9 = sand.u32 1, %s4463_s28  }
 0x177   : > { %s4547_s29 = smov (%p58_p8, %s4545_s29), 0  ;;  %p3962_p0 = por %p376_p12, %p78_p3 }
 0x178   : > { %4476 = sst [smem:[#allocation51_spill]] %s4547_s29  ;;  %s60_s4 = ssub.s32 %s3431_s19, %s4547_s29 }
 0x179   : > { %s4477_s6 = scalar_select %p3962_p0, 1, 0 }
 0x17a   : > { %s2439_s25 = sshll.u32 %s514_s9, 3  ;;  %s62_s30 = sor.u32 %s61_s3, %s60_s4 }
 0x17b   : > { %4478 = sst [smem:[#allocation52_spill]] %s4477_s6  ;;  %s4479_s1 = ssub.s32 %s3423_s17, %s4539_s2 }
 0x17c   : > { %s90_s5 = sor.u32 %s4479_s1, %s60_s4  ;;  %p63_p13 = scmp.eq.s32.totalorder %s62_s30, 0 }
 0x17d   : > { %p91_p7 = scmp.eq.s32.totalorder %s90_s5, 0  ;;  %s4480_s13 = sshll.u32 %s3431_s19, 1 }
 0x17e   : > { %s523_s11 = sadd.s32 %s4462_s16, %s4480_s13  ;;  %s4549_s28 = smov (!%p63_p13, %s4463_s28), %s65_s12 }
 0x17f   : > { %s4481_s23 = sadd.s32 1, %s3395_s27  ;;  %s2441_s24 = sshll.u32 %s523_s11, 7 }
 0x180   : > { %s3980_s10 = scalar_select %p91_p7, %s3395_s27, %s4481_s23  }
 0x181   : > { %s518_s22 = scalar_lea.vmem [#allocation6], %s2439_s25  ;;  %s4482_s29 = sld [smem:[#allocation53_spill]] }
 0x182   : > { %s527_s26 = sshll.u32 %s518_s22, 4  ;;  %p4484_p6 = scmp.lt.s32.totalorder %s3435_s20, 8  ;;  %s3987_s26 = int_to_ptr.vmem [resolvable:$true] %s527_s26 }
 0x183   : > { %s558_s11 = scalar_lea.vmem [#allocation11], %s3781_s14  ;;  %s4486_s23 = sshll.u32 %s3786_s0, 7 }
 0x184   : > { %p3993_p1 = pnand %p4484_p6, %p3937_p9  ;;  %s567_s22 = sshll.u32 %s558_s11, 4  ;;  %s4005_s22 = int_to_ptr.vmem [resolvable:$true] %s567_s22 }
 0x185   : > { %s4487_s16 = sld [smem:[#allocation55_spill]]  ;;  %s515_s3 = scalar_lea.sflag [#allocation7], %s514_s9 }
 0x186   : > { %p3215_p4 = pneg %p3993_p1 }
 0x187   : > { %s4483_s7 = smov %s4482_s29  ;;  %s3985_s18 = scalar_lea.hbm %s4482_s29, %s2441_s24 }
 0x188   : > { %s3213_s8 = scalar_lea.hbm %s3985_s18, 128  ;;  %s3218_s0 = scalar_lea.hbm %s4483_s7, 512 }
 0x189   : > { %p3214_p3 = scmp.ne.s32.totalorder %s3985_s18, %s3213_s8  ;;  %p3219_p5 = scmp.lt.u32.totalorder %s3985_s18, %s4483_s7 }
 0x18a   : > { %p3220_p8 = scmp.lt.u32.totalorder %s3218_s0, %s3213_s8  ;;  %p3222_p13 = scmp.lt.u32.totalorder %s3213_s8, %s3985_s18 }
 0x18b   : > { %s4488_s12 = smov %s4487_s16  ;;  %s4003_s29 = scalar_lea.hbm %s4487_s16, %s4486_s23 }
 0x18c   : > { %p3216_p9 = pnand %p3215_p4, %p3214_p3  ;;  %p3221_p12 = por %p3220_p8, %p3219_p5 }
 0x18e   : > { %p3217_p11 = pneg %p3216_p9  ;;  %p3223_p7 = por %p3222_p13, %p3221_p12 }
 0x190   : > { %p3224_p6 = pnand %p3223_p7, %p3217_p11 }
 0x192   : > { %3227 = shalt.err (!%p3224_p6)
}
 0x193   : > { %s3228_s9 = scalar_lea.vmem %s3987_s26, 128  ;;  %s3450_s25 = smov [#allocation6]  }
 0x194   : > { %p3229_p3 = scmp.ne.s32.totalorder %s3987_s26, %s3228_s9  ;;  %s3233_s30 = sshll.u32 %s3450_s25, 4  ;;  %s3234_s30 = int_to_ptr.vmem [resolvable:$false] %s3233_s30 }
 0x195   : > { %s3235_s13 = scalar_lea.vmem %s3234_s30, 256  ;;  %p3236_p10 = scmp.lt.s32.totalorder %s3987_s26, %s3234_s30 }
 0x196   : > { %p3231_p9 = pnand %p3229_p3, %p3215_p4  ;;  %p3237_p5 = scmp.lt.s32.totalorder %s3235_s13, %s3228_s9 }
 0x198   : > { %p3232_p0 = pneg %p3231_p9  ;;  %p3238_p8 = por %p3237_p5, %p3236_p10 }
 0x19a   : > { %p3239_p12 = pnand %p3238_p8, %p3232_p0 }
 0x19c   : > { %3242 = shalt.err (!%p3239_p12)
}
 0x19d   : > { %2694 = dma.hbm_to_vmem [thread:$0]  (!%p3993_p1), %s3985_s18, 128, %s3987_s26, %s515_s3  }
 0x19e   : > { %s3243_s11 = scalar_lea.hbm %s4003_s29, 128  ;;  %p4489_p11 = scmp.ne.s32.totalorder %s4453_s15, 0 }
 0x19f   : > { %p3244_p4 = scmp.ne.s32.totalorder %s4003_s29, %s3243_s11  ;;  %s3248_s1 = scalar_lea.hbm %s4488_s12, 512 }
 0x1a0   : > { %p4490_p13 = pneg %p4489_p11  ;;  %p3249_p10 = scmp.lt.u32.totalorder %s4003_s29, %s4488_s12 }
 0x1a1   : > { %p3250_p0 = scmp.lt.u32.totalorder %s3248_s1, %s3243_s11  ;;  %p3252_p9 = scmp.lt.u32.totalorder %s3243_s11, %s4003_s29 }
 0x1a2   : > { %p3246_p7 = pnand %p3244_p4, %p4490_p13 }
 0x1a3   : > { %p3251_p3 = por %p3250_p0, %p3249_p10 }
 0x1a4   : > { %p3247_p6 = pneg %p3246_p7 }
 0x1a5   : > { %p3253_p5 = por %p3252_p9, %p3251_p3 }
 0x1a7   : > { %p3254_p8 = pnand %p3253_p5, %p3247_p6 }
 0x1a9   : > { %3257 = shalt.err (!%p3254_p8)
}
 0x1aa   : > { %s3258_s26 = scalar_lea.vmem %s4005_s22, 128  ;;  %p4491_p12 = pmov %p4490_p13 }
 0x1ab   : > { %p3259_p1 = scmp.ne.s32.totalorder %s4005_s22, %s3258_s26  ;;  %s3451_s18 = smov [#allocation11]  }
 0x1ac   : > { %s3263_s3 = sshll.u32 %s3451_s18, 4  ;;  %s3264_s3 = int_to_ptr.vmem [resolvable:$false] %s3263_s3 }
 0x1ad   : > { %p3261_p4 = pnand %p3259_p1, %p4491_p12  ;;  %s3265_s8 = scalar_lea.vmem %s3264_s3, 256 }
 0x1ae   : > { %p3266_p7 = scmp.lt.s32.totalorder %s4005_s22, %s3264_s3  ;;  %p3267_p10 = scmp.lt.s32.totalorder %s3265_s8, %s3258_s26 }
 0x1af   : > { %p3262_p13 = pneg %p3261_p4 }
 0x1b0   : > { %p3268_p0 = por %p3267_p10, %p3266_p7 }
 0x1b2   : > { %p3269_p3 = pnand %p3268_p0, %p3262_p13 }
 0x1b4   : > { %3272 = shalt.err (!%p3269_p3)
}
 0x1b5   : > { %s4492_s24 = sld [smem:[#allocation47_spill]]  ;;  %s4493_s14 = sld [smem:[#allocation45_spill]] }
 0x1bb   : > { %2700 = dma.hbm_to_vmem [thread:$0]  (!%p4489_p11), %s4003_s29, 128, %s4005_s22, %s4492_s24  }
 0x1bc   : > { %p4494_p6 = scmp.ne.s32.totalorder %s4493_s14, 0 }
 0x1bd   : > { %s4495_s0 = sld [smem:[#allocation38_spill]] (!%p4494_p6) }
 0x1be   : > { %576 = sbr.rel (%p4494_p6) target bundleno = 2728 (0xaa8), region = 72 }
 0x1c3   : > { %s4059_s4 = sand.u32 (!%p4494_p6), 1, %s4495_s0  }
 0x1c4   : > { %s2449_s9 = sshll.u32 (!%p4494_p6), %s4059_s4, 3  ;;  %s579_s25 = scalar_lea.sflag (!%p4494_p6), [#allocation7], %s4059_s4 }
 0x1c5   : > { %s582_s30 = scalar_lea.vmem [#allocation6], %s2449_s9 }
 0x1c6   : > { %3354 = dma.done.wait (%p3951_p2), %s579_s25, 128  }
 0x1c7   : > { %3356 = vsyncadd (%p3951_p2), %s579_s25, 4294967168  ;;  %s4497_s15 = sld [smem:[#allocation44_spill]]  ;;  %s4498_s13 = sld [smem:[#allocation36_spill]] }
 0x1c8   : > { %s4499_s22 = sld [smem:[#allocation46_spill]] }
 0x1cd   : > { %s587_s29 = sand.u32 1, %s4497_s15   ;;  %s589_s11 = sand.u32 1, %s4498_s13  }
 0x1ce   : > { %s4069_s23 = sshll.u32 %s589_s11, 3  ;;  %s588_s21 = scalar_lea.sflag [#allocation10], %s587_s29 }
 0x1cf   : > { %s591_s1 = scalar_lea.vmem [#allocation9], %s4069_s23  ;;  %p4500_p11 = scmp.ne.s32.totalorder %s4499_s22, 0 }
 0x1d1   : > { %3358 = dma.done.wait (%p4500_p11), %s588_s21, 256  }
 0x1d2   : > { %3360 = vsyncadd (%p4500_p11), %s588_s21, 4294967040  ;;  %s600_s16 = scalar_lea.vmem [#allocation11], %s4069_s23  ;;  %p4501_p9 = scmp.eq.s32.totalorder %s4497_s15, 0 }
 0x1d4   : > { %3362 = dma.done.wait (%p4501_p9), [#allocation13], 272   ;;  %p4502_p2 = pmov %p4501_p9 }
 0x1d6   : > { %3364 = vsyncadd (%p4502_p2), [#allocation13], 4294967024  ;;  %p4503_p5 = pmov %p4502_p2 }
 0x1d7   : > { %p4504_p8 = pmov %p4502_p2 }
 0x1d8   : > { %3366 = dma.done.wait (%p4503_p5), [#allocation16], 272  }
 0x1d9   : > { %3368 = vsyncadd (%p4504_p8), [#allocation16], 4294967024  ;;  %p4505_p1 = pmov %p4502_p2 }
 0x1db   : > { %3370 = dma.done.wait (%p4505_p1), [#allocation19], 272   ;;  %p4506_p12 = pmov %p4505_p1 }
 0x1dc   : > { %p4507_p4 = pmov %p4505_p1 }
 0x1dd   : > { %3372 = vsyncadd (%p4506_p12), [#allocation19], 4294967024 }
 0x1de   : > { %3374 = dma.done.wait (%p4507_p4), [#allocation22], 272   ;;  %p4508_p13 = pmov %p4505_p1 }
 0x1df   : > { %p4509_p7 = pmov %p4505_p1 }
 0x1e0   : > { %3376 = vsyncadd (%p4508_p13), [#allocation22], 4294967024 }
 0x1e1   : > { %3378 = dma.done.wait (%p4509_p7), [#allocation25], 32   ;;  %p4510_p10 = pmov %p4505_p1 }
 0x1e2   : > { %v4097_v0 = vld [vmem:[%s582_s30] sm:$0xff]  ;;  %s4099_s5 = scalar_lea.vmem [#allocation27], %s2449_s9  ;;  %s4511_s26 = sld [smem:[#allocation40_spill]] }
 0x1e3   : > { %3380 = vsyncadd (%p4510_p10), [#allocation25], 4294967264 }
 0x1e8   : > { %p2463_p0 = scmp.ne.s32.totalorder %s4511_s26, 0 }
 0x1e9   : > { %vm922_vm0 = vcmask (!%p2463_p0), 7168   ;;  %vm931_vm1 = vcmask (!%p2463_p0), 64512   ;;  %v3452_v1 = vmov (!%p2463_p0), 0.0   ;;  %v3453_v2 = vmov (!%p2463_p0), -inf   ;;  %v2865_v3 = vld [vmem:[#allocation12] sm:$0xff] (!%p2463_p0)   ;;  %v2866_v4 = vld [vmem:[#allocation12 + $0x8] sm:$0xff] (!%p2463_p0)  }
 0x1ea   : > { %698 = sbr.rel (%p2463_p0) target bundleno = 853 (0x355), region = 128  ;;  %2532 = vmatprep.subr.bf16.mxu0 (!%p2463_p0), %v3452_v1  ;;  %923 = vst.msk [vmem:[#allocation3] sm:$0xff] (!%p2463_p0), %vm922_vm0, %v3453_v2  ;;  %924 = vst.msk [vmem:[#allocation3 + $0x8] sm:$0xff] (!%p2463_p0), %vm922_vm0, %v3453_v2  ;;  %vm3454_vm2 = vmmov (!%p2463_p0), 0   ;;  %v699_v5 = vpack.c.bf16 (!%p2463_p0), %v4097_v0, %v4097_v0  ;;  %vm723_vm3 = vcmask (!%p2463_p0), 261120   ;;  %s3455_s18 = smov (!%p2463_p0), 104   ;;  %v782_v14 = vlaneseq (!%p2463_p0) }
 0x1eb   : > { %925 = vst.msk [vmem:[#allocation3 + $0x10] sm:$0xff] (!%p2463_p0), %vm922_vm0, %v3453_v2  ;;  %926 = vst.msk [vmem:[#allocation3 + $0x18] sm:$0xff] (!%p2463_p0), %vm922_vm0, %v3453_v2  ;;  %2536 = vmatprep.mubr.msk.bf16.mxu0 (!%p2463_p0), %vm3454_vm2, %v3452_v1  ;;  %2533 = vmatpush3.bf16.msra.mxu0 (!%p2463_p0), %v2865_v3  ;;  %v2464_v6 = vld [vmem:[#allocation14] ss:$0 sm:$0xff] (!%p2463_p0)  ;;  %s3456_s3 = smov (!%p2463_p0), 120   ;;  %s3457_s8 = smov (!%p2463_p0), 112  }
 0x1ec   : > { %927 = vst.msk [vmem:[#allocation4] sm:$0xff] (!%p2463_p0), %vm922_vm0, %v3452_v1  ;;  %928 = vst.msk [vmem:[#allocation4 + $0x8] sm:$0xff] (!%p2463_p0), %vm922_vm0, %v3452_v1  ;;  %2534 = vmatprep.subr.bf16.mxu0 (!%p2463_p0), %v3452_v1  ;;  %v3458_v12 = vmov (!%p2463_p0), 1983009808   ;;  %v3459_v15 = vmov (!%p2463_p0), 1934713408  }
 0x1ed   : > { %929 = vst.msk [vmem:[#allocation4 + $0x10] sm:$0xff] (!%p2463_p0), %vm922_vm0, %v3452_v1  ;;  %930 = vst.msk [vmem:[#allocation4 + $0x18] sm:$0xff] (!%p2463_p0), %vm922_vm0, %v3452_v1  ;;  %v780_v13 = vunpack.c.l.s4 (!%p2463_p0), %v3458_v12  ;;  %v812_v16 = vunpack.c.l.s4 (!%p2463_p0), %v3459_v15  ;;  %v783_v18 = vshrl.u32 (!%p2463_p0), %v782_v14, 7  ;;  %vm917_vm4 = vcmask (!%p2463_p0), 60416  }
 0x1ee   : > { %932 = vst.msk [vmem:[#allocation5] sm:$0xff] (!%p2463_p0), %vm931_vm1, %v3452_v1  ;;  %933 = vst.msk [vmem:[#allocation5 + $0x8] sm:$0xff] (!%p2463_p0), %vm931_vm1, %v3452_v1 }
 0x1ef   : > { %934 = vst.msk [vmem:[#allocation5 + $0x10] sm:$0xff] (!%p2463_p0), %vm931_vm1, %v3452_v1  ;;  %935 = vst.msk [vmem:[#allocation5 + $0x18] sm:$0xff] (!%p2463_p0), %vm931_vm1, %v3452_v1  ;;  %2535 = vmatpush3.bf16.msra.mxu0 (!%p2463_p0), %v2866_v4  ;;  %v781_v17 = vunpack.c.0.s8 (!%p2463_p0), %v780_v13  ;;  %v813_v21 = vunpack.c.0.s8 (!%p2463_p0), %v812_v16 }
 0x1f1   : > { %v784_v22 = vsub.s32 %v781_v17, %v783_v18  ;;  %v816_v28 = vsub.s32 %v813_v21, %v783_v18 }
 0x1f2   : > { %2537 = vmatmul.mubr.msk.bf16.vlgmr.msra.gmra.mrb[0].mxu0 %vm723_vm3, %v699_v5 }
 0x2c5   : > { %v761_v7 = vpop.f32.mrb[0].mxu0 }
 0x2c6   : > { %v762_v8 = vadd.f32 %v2464_v6, %v761_v7  ;;  %v2538_v9 = vpop.f32.mrb[1].mxu0 }
 0x2c7   : > { %v764_v10 = vpop.f32.mrb[2].mxu0 }
 0x2c8   : > { %774 = vrot.lane.b32.xlu1 %v762_v8, %s3455_s18  ;;  %768 = vrot.lane.b32.xlu0 %v762_v8, %s3456_s3  ;;  %v2539_v11 = vpop.f32.mrb[3].mxu0 }
 0x2cc   : > { %771 = vrot.lane.b32.xlu0 %v762_v8, %s3457_s8 }
 0x33a   : > { %v775_v19 = vpop.permute.xlu1 %774  ;;  %v769_v20 = vpop.permute.xlu0 %768 }
 0x33b   : > { %v793_v23 = vcombine.low %v769_v20, %v775_v19  ;;  %v794_v24 = vcombine.high %v769_v20, %v775_v19 }
 0x33d   : > { %v801_v29 = vrot.slane %v793_v23, %v784_v22  ;;  %v808_v30 = vrot.slane %v794_v24, %v784_v22 }
 0x33e   : > { %v772_v25 = vpop.permute.xlu0 %771 }
 0x33f   : > { %v777_v26 = vcombine.low %v762_v8, %v772_v25  ;;  %v778_v27 = vcombine.high %v762_v8, %v772_v25 }
 0x341   : > { %v785_v31 = vrot.slane %v777_v26, %v784_v22  ;;  %v792_v32 = vrot.slane %v778_v27, %v784_v22 }
 0x343   : > { %v809_v33 = vcombine.low %v785_v31, %v801_v29  ;;  %v810_v34 = vcombine.high %v785_v31, %v801_v29  ;;  %v825_v35 = vcombine.low %v792_v32, %v808_v30  ;;  %v826_v36 = vcombine.high %v792_v32, %v808_v30 }
 0x345   : > { %v817_v37 = vrot.slane %v809_v33, %v816_v28  ;;  %v824_v38 = vrot.slane %v810_v34, %v816_v28  ;;  %v833_v39 = vrot.slane %v825_v35, %v816_v28  ;;  %v840_v40 = vrot.slane %v826_v36, %v816_v28 }
 0x347   : > { %v845_v41 = vcombine.low %v817_v37, %v824_v38  ;;  %v2468_v42 = vcombine.high %v817_v37, %v824_v38  ;;  %v861_v43 = vcombine.low %v833_v39, %v840_v40  ;;  %v2469_v44 = vcombine.high %v833_v39, %v840_v40 }
 0x349   : > { %v852_v45 = vrot.slane %v845_v41, %v784_v22  ;;  %v860_v46 = vrot.slane %v2468_v42, %v784_v22  ;;  %v868_v47 = vrot.slane %v861_v43, %v784_v22  ;;  %v876_v48 = vrot.slane %v2469_v44, %v784_v22 }
 0x34b   : > { %v877_v49 = vcombine.low %v852_v45, %v860_v46  ;;  %v878_v50 = vcombine.high %v852_v45, %v860_v46  ;;  %v893_v51 = vcombine.low %v868_v47, %v876_v48  ;;  %v894_v52 = vcombine.high %v868_v47, %v876_v48 }
 0x34d   : > { %v885_v53 = vrot.slane %v877_v49, %v816_v28  ;;  %v892_v54 = vrot.slane %v878_v50, %v816_v28  ;;  %v901_v55 = vrot.slane %v893_v51, %v816_v28  ;;  %v908_v56 = vrot.slane %v894_v52, %v816_v28 }
 0x34f   : > { %v909_v57 = vcombine.low %v885_v53, %v901_v55  ;;  %v910_v58 = vcombine.high %v885_v53, %v901_v55  ;;  %v911_v59 = vcombine.low %v892_v54, %v908_v56  ;;  %v912_v60 = vcombine.high %v892_v54, %v908_v56 }
 0x351   : > { %v913_v61 = vpack.c.bf16 %v909_v57, %v909_v57  ;;  %v914_v62 = vpack.c.bf16 %v910_v58, %v910_v58  ;;  %v915_v63 = vpack.c.bf16 %v911_v59, %v911_v59  ;;  %v916_v1 = vpack.c.bf16 %v912_v60, %v912_v60 }
 0x353   : > { %918 = vst.msk [vmem:[#allocation2] sm:$0xf] %vm917_vm4, %v913_v61  ;;  %919 = vst.msk [vmem:[#allocation2 + $0x4] sm:$0xf] %vm917_vm4, %v914_v62 }
 0x354   : > { %920 = vst.msk [vmem:[#allocation2 + $0x8] sm:$0xf] %vm917_vm4, %v915_v63  ;;  %921 = vst.msk [vmem:[#allocation2 + $0xc] sm:$0xf] %vm917_vm4, %v916_v1 }
 0x355 PF: > { %v2869_v2 = vld [vmem:[#allocation15] sm:$0xff]   ;;  %v3460_v3 = vmov 0.0   ;;  %v2870_v4 = vld [vmem:[#allocation15 + $0x8] sm:$0xff]   ;;  %vm3461_vm5 = vmmov 0   ;;  %vm963_vm6 = vcmask 261120   ;;  %v2871_v9 = vld [vmem:[#allocation18] sm:$0xff]   ;;  %v1088_v19 = vlaneseq }
 0x356   : > { %2540 = vmatprep.subr.bf16.mxu0 %v3460_v3  ;;  %2548 = vmatprep.subr.bf16.mxu1 %v3460_v3  ;;  %v936_v5 = vld [vmem:[%s591_s1] sm:$0xff]  ;;  %s3462_s24 = smov 104   ;;  %s3463_s14 = smov 120   ;;  %v938_v15 = vld [vmem:[%s600_s16] sm:$0xff]  ;;  %v3465_v17 = vmov 1983009808  }
 0x357   : > { %2541 = vmatpush3.bf16.msra.mxu0 %v2869_v2  ;;  %2544 = vmatprep.mubr.msk.bf16.mxu0 %vm3461_vm5, %v3460_v3  ;;  %v937_v6 = vpack.c.bf16 %v936_v5, %v936_v5  ;;  %v2470_v7 = vld [vmem:[#allocation17] ss:$0 sm:$0xff]  ;;  %v2872_v14 = vld [vmem:[#allocation18 + $0x8] sm:$0xff]   ;;  %v939_v16 = vpack.c.bf16 %v938_v15, %v938_v15  ;;  %s3464_s0 = smov 112   ;;  %v1086_v18 = vunpack.c.l.s4 %v3465_v17  ;;  %v3466_v20 = vmov 1934713408  }
 0x358   : > { %2542 = vmatprep.subr.bf16.mxu0 %v3460_v3  ;;  %2552 = vmatprep.mubr.msk.bf16.mxu1 %vm3461_vm5, %v3460_v3  ;;  %v1118_v21 = vunpack.c.l.s4 %v3466_v20  ;;  %v1089_v23 = vshrl.u32 %v1088_v19, 7  ;;  %vm1377_vm7 = vcmask 64512   ;;  %vm1650_vm8 = vcmask 7168   ;;  %s4512_s6 = sld [smem:[#allocation40_spill]] }
 0x359   : > { %2549 = vmatpush3.bf16.msra.mxu1 %v2871_v9  ;;  %v1087_v22 = vunpack.c.0.s8 %v1086_v18  ;;  %vm1690_vm9 = vcmask 1043456  }
 0x35a   : > { %2550 = vmatprep.subr.bf16.mxu1 %v3460_v3  ;;  %v1119_v26 = vunpack.c.0.s8 %v1118_v21 }
 0x35b   : > { %2543 = vmatpush3.bf16.msra.mxu0 %v2870_v4  ;;  %v4127_v27 = vsub.s32 %v1087_v22, %v1089_v23  ;;  %v1376_v15 = vld [vmem:[#allocation2 + $0xc] sm:$0xf] }
 0x35c   : > { %2556 = vmatprep.subr.bf16.mxu0 %v3460_v3  ;;  %v4129_v33 = vsub.s32 %v1119_v26, %v1089_v23 }
 0x35d   : > { %2551 = vmatpush3.bf16.msra.mxu1 %v2872_v14  ;;  %v1375_v14 = vld [vmem:[#allocation2 + $0x8] sm:$0xf] }
 0x35e   : > { %2545 = vmatmul.mubr.msk.bf16.vlgmr.msra.gmra.mrb[0].mxu0 %vm963_vm6, %v937_v6  ;;  %2562 = vmatprep.subr.bf16.mxu1 %v3460_v3  ;;  %p2490_p3 = scmp.ne.s32.totalorder %s4512_s6, 1 }
 0x35f   : > { %2558 = vmatprep.mubr.msk.bf16.mxu0 %vm3461_vm5, %v3460_v3  ;;  %vm3470_vm10 = vmmov (!%p2490_p3), 0   ;;  %s3471_s9 = smov (!%p2490_p3), 16   ;;  %s3472_s25 = smov (!%p2490_p3), 8   ;;  %vm2073_vm11 = vcmask (!%p2490_p3), 130048   ;;  %vm2075_vm12 = vcmask (!%p2490_p3), 195584  }
 0x360   : > { %2553 = vmatmul.mubr.msk.bf16.vlgmr.msra.gmra.mrb[0].mxu1 %vm963_vm6, %v939_v16  ;;  %s3473_s30 = smov (!%p2490_p3), 24  }
 0x361   : > { %2564 = vmatprep.mubr.msk.bf16.mxu1 %vm3461_vm5, %v3460_v3 }
 0x431   : > { %v1001_v8 = vpop.f32.mrb[0].mxu0 }
 0x432   : > { %v1002_v10 = vadd.f32 %v2470_v7, %v1001_v8  ;;  %v2546_v11 = vpop.f32.mrb[1].mxu0 }
 0x433   : > { %v1004_v12 = vpop.f32.mrb[2].mxu0  ;;  %v1374_v11 = vld [vmem:[#allocation2 + $0x4] sm:$0xf]  ;;  %v1067_v16 = vpop.f32.mrb[0].mxu1 }
 0x434   : > { %1080 = vrot.lane.b32.xlu1 %v1002_v10, %s3462_s24  ;;  %1074 = vrot.lane.b32.xlu0 %v1002_v10, %s3463_s14  ;;  %v2547_v13 = vpop.f32.mrb[3].mxu0  ;;  %v2554_v17 = vpop.f32.mrb[1].mxu1 }
 0x435   : > { %v1070_v18 = vpop.f32.mrb[2].mxu1 }
 0x436   : > { %v2555_v19 = vpop.f32.mrb[3].mxu1 }
 0x438   : > { %1077 = vrot.lane.b32.xlu0 %v1002_v10, %s3464_s0 }
 0x4a6   : > { %v1081_v24 = vpop.permute.xlu1 %1080  ;;  %v1075_v25 = vpop.permute.xlu0 %1074 }
 0x4a7   : > { %v1099_v28 = vcombine.low %v1075_v25, %v1081_v24  ;;  %v1100_v29 = vcombine.high %v1075_v25, %v1081_v24 }
 0x4a9   : > { %v1107_v34 = vrot.slane %v1099_v28, %v4127_v27  ;;  %v1114_v35 = vrot.slane %v1100_v29, %v4127_v27 }
 0x4aa   : > { %v1078_v30 = vpop.permute.xlu0 %1077 }
 0x4ab   : > { %v1083_v31 = vcombine.low %v1002_v10, %v1078_v30  ;;  %v1084_v32 = vcombine.high %v1002_v10, %v1078_v30  ;;  %v1373_v10 = vld [vmem:[#allocation2] sm:$0xf] }
 0x4ad   : > { %v1091_v36 = vrot.slane %v1083_v31, %v4127_v27  ;;  %v1098_v37 = vrot.slane %v1084_v32, %v4127_v27 }
 0x4af   : > { %v1115_v38 = vcombine.low %v1091_v36, %v1107_v34  ;;  %v1116_v39 = vcombine.high %v1091_v36, %v1107_v34  ;;  %v1131_v40 = vcombine.low %v1098_v37, %v1114_v35  ;;  %v1132_v41 = vcombine.high %v1098_v37, %v1114_v35 }
 0x4b1   : > { %v1123_v42 = vrot.slane %v1115_v38, %v4129_v33  ;;  %v1130_v43 = vrot.slane %v1116_v39, %v4129_v33  ;;  %v1139_v44 = vrot.slane %v1131_v40, %v4129_v33  ;;  %v1146_v45 = vrot.slane %v1132_v41, %v4129_v33 }
 0x4b3   : > { %v1151_v46 = vcombine.low %v1123_v42, %v1130_v43  ;;  %v2478_v47 = vcombine.high %v1123_v42, %v1130_v43  ;;  %v1167_v48 = vcombine.low %v1139_v44, %v1146_v45  ;;  %v2479_v49 = vcombine.high %v1139_v44, %v1146_v45  ;;  %v2474_v43 = vld [vmem:[#allocation20] ss:$0 sm:$0xff]  ;;  %v1563_v45 = vld [vmem:[#allocation3 + $0x8] sm:$0xff] }
 0x4b4   : > { %v3467_v42 = vmov 0   ;;  %v1068_v44 = vadd.f32 %v2474_v43, %v1067_v16 }
 0x4b5   : > { %v1158_v50 = vrot.slane %v1151_v46, %v4127_v27  ;;  %v1166_v51 = vrot.slane %v2478_v47, %v4127_v27  ;;  %v1174_v52 = vrot.slane %v1167_v48, %v4127_v27  ;;  %v1182_v53 = vrot.slane %v2479_v49, %v4127_v27  ;;  %2868 = vset.pattern.permute.xlu1 %v3467_v42  ;;  %v1562_v46 = vld [vmem:[#allocation3] sm:$0xff] }
 0x4b6   : > { %2867 = vset.pattern.permute.xlu0 %v3467_v42 }
 0x4b7   : > { %v1183_v54 = vcombine.low %v1158_v50, %v1166_v51  ;;  %v1199_v55 = vcombine.low %v1174_v52, %v1182_v53  ;;  %v1184_v56 = vcombine.high %v1158_v50, %v1166_v51  ;;  %v1200_v57 = vcombine.high %v1174_v52, %v1182_v53 }
 0x4b9   : > { %v1191_v58 = vrot.slane %v1183_v54, %v4129_v33  ;;  %v1207_v59 = vrot.slane %v1199_v55, %v4129_v33  ;;  %v1198_v62 = vrot.slane %v1184_v56, %v4129_v33  ;;  %v1214_v63 = vrot.slane %v1200_v57, %v4129_v33  ;;  %v4188_v55 = vld [vmem:[#allocation3 + $0x18] sm:$0xff]  ;;  %v4190_v56 = vld [vmem:[#allocation3 + $0x10] sm:$0xff] }
 0x4bb   : > { %v1215_v60 = vcombine.low %v1191_v58, %v1207_v59  ;;  %v1216_v61 = vcombine.high %v1191_v58, %v1207_v59  ;;  %v1217_v6 = vcombine.low %v1198_v62, %v1214_v63  ;;  %v1218_v7 = vcombine.high %v1198_v62, %v1214_v63 }
 0x4bd   : > { %v1219_v1 = vpack.c.bf16 %v1215_v60, %v1215_v60  ;;  %v1220_v2 = vpack.c.bf16 %v1216_v61, %v1216_v61  ;;  %v1221_v8 = vpack.c.bf16 %v1217_v6, %v1217_v6  ;;  %v1222_v9 = vpack.c.bf16 %v1218_v7, %v1218_v7 }
 0x4bf   : > { %v1382_v4 = vsel %vm1377_vm7, %v1219_v1, 0  ;;  %v1428_v5 = vsel %vm1377_vm7, %v1220_v2, 0  ;;  %v1474_v12 = vsel %vm1377_vm7, %v1221_v8, 0  ;;  %v1520_v13 = vsel %vm1377_vm7, %v1222_v9, 0 }
 0x4c0   : > { %2557 = vmatpush3.bf16.xpose.msra.mxu0 %v1382_v4  ;;  %2563 = vmatpush3.bf16.xpose.msra.mxu1 %v1428_v5 }
 0x4c1   : > { %2568 = vmatprep.subr.bf16.mxu0 %v3460_v3  ;;  %2574 = vmatprep.subr.bf16.mxu1 %v3460_v3 }
 0x4c7   : > { %2559 = vmatmul.mubr.msk.bf16.vlgmr.msra.gmra.mrb[4].mxu0 %vm1377_vm7, %v1373_v10  ;;  %2565 = vmatmul.mubr.msk.bf16.vlgmr.msra.gmra.mrb[4].mxu1 %vm1377_vm7, %v1374_v11 }
 0x4c8   : > { %2569 = vmatpush3.bf16.xpose.msra.mxu0 %v1474_v12  ;;  %2575 = vmatpush3.bf16.xpose.msra.mxu1 %v1520_v13 }
 0x4c9   : > { %2570 = vmatprep.mubr.msk.bf16.mxu0 %vm3461_vm5, %v3460_v3  ;;  %2576 = vmatprep.mubr.msk.bf16.mxu1 %vm3461_vm5, %v3460_v3 }
 0x4ca   : > { %2580 = vmatprep.subr.bf16.mxu0 %v3460_v3  ;;  %2586 = vmatprep.subr.bf16.mxu1 %v3460_v3 }
 0x4cf   : > { %2571 = vmatmul.mubr.msk.bf16.vlgmr.msra.gmra.mrb[8].mxu0 %vm1377_vm7, %v1375_v14  ;;  %2577 = vmatmul.mubr.msk.bf16.vlgmr.msra.gmra.mrb[8].mxu1 %vm1377_vm7, %v1376_v15 }
 0x4d0   : > { %2582 = vmatprep.mubr.msk.bf16.mxu0 %vm3461_vm5, %v3460_v3  ;;  %2588 = vmatprep.mubr.msk.bf16.mxu1 %vm3461_vm5, %v3460_v3 }
 0x59a   : > { %v4167_v20 = vpop.f32.mrb[4].mxu0  ;;  %v4169_v21 = vpop.f32.mrb[4].mxu1 }
 0x59b   : > { %v2560_v22 = vpop.f32.mrb[5].mxu0  ;;  %v2566_v23 = vpop.f32.mrb[5].mxu1  ;;  %v1569_v24 = vsel %vm1377_vm7, %v4169_v21, -inf  ;;  %v1566_v25 = vsel %vm1377_vm7, %v4167_v20, -inf }
 0x59c   : > { %1570 = vmax.xlane.f32.xlu0 %v1569_v24  ;;  %v1467_v26 = vpop.f32.mrb[6].mxu1  ;;  %1567 = vmax.xlane.f32.xlu1 %v1566_v25  ;;  %v1421_v28 = vpop.f32.mrb[6].mxu0 }
 0x59d   : > { %v2561_v29 = vpop.f32.mrb[7].mxu0  ;;  %v2567_v30 = vpop.f32.mrb[7].mxu1 }
 0x5a2   : > { %v4175_v31 = vpop.f32.mrb[8].mxu0  ;;  %v4177_v32 = vpop.f32.mrb[8].mxu1 }
 0x5a3   : > { %v2572_v34 = vpop.f32.mrb[9].mxu0  ;;  %v2578_v35 = vpop.f32.mrb[9].mxu1  ;;  %v1575_v36 = vsel %vm1377_vm7, %v4177_v32, -inf  ;;  %v1572_v37 = vsel %vm1377_vm7, %v4175_v31, -inf }
 0x5a4   : > { %v1559_v38 = vpop.f32.mrb[10].mxu1  ;;  %1576 = vmax.xlane.f32.xlu1 %v1575_v36  ;;  %1573 = vmax.xlane.f32.xlu0 %v1572_v37  ;;  %v1513_v39 = vpop.f32.mrb[10].mxu0 }
 0x5a5   : > { %v2573_v40 = vpop.f32.mrb[11].mxu0  ;;  %v2579_v41 = vpop.f32.mrb[11].mxu1 }
 0x5b5   : > { %1227 = vrot.lane.b32.xlu1 %v1068_v44, %s3464_s0 }
 0x5b9   : > { %1230 = vrot.lane.b32.xlu1 %v1068_v44, %s3462_s24 }
 0x5ba   : > { %1224 = vrot.lane.b32.xlu0 %v1068_v44, %s3463_s14 }
 0x629   : > { %v1571_v47 = vpop.xlane.xlu0 %1570  ;;  %v1568_v48 = vpop.xlane.xlu1 %1567 }
 0x62a   : > { %v1579_v49 = vmax.f32 %v1563_v45, %v1571_v47  ;;  %v1578_v50 = vmax.f32 %v1562_v46, %v1568_v48 }
 0x62c   : > { %v1583_v51 = vsub.f32 %v1563_v45, %v1579_v49  ;;  %1881 = vst.msk [vmem:[#allocation3 + $0x8] sm:$0xff] %vm1650_vm8, %v1579_v49  ;;  %v1582_v52 = vsub.f32 %v1562_v46, %v1578_v50  ;;  %1880 = vst.msk [vmem:[#allocation3] sm:$0xff] %vm1650_vm8, %v1578_v50  ;;  %1601 = vperm.xlu1 %2868, %v1579_v49   ;;  %1596 = vperm.xlu0 %2867, %v1578_v50  }
 0x62e   : > { %v1588_v53 = vmul.f32 1.442695, %v1583_v51  ;;  %v1586_v54 = vmul.f32 1.442695, %v1582_v52 }
 0x630   : > { %2873 = vpow2.f32 %v1588_v53 }
 0x631   : > { %2875 = vpow2.f32 %v1586_v54  ;;  %v1577_v57 = vpop.xlane.xlu1 %1576  ;;  %v1574_v58 = vpop.xlane.xlu0 %1573 }
 0x632   : > { %v4193_v59 = vmax.f32 %v4188_v55, %v1577_v57  ;;  %v4196_v60 = vmax.f32 %v4190_v56, %v1574_v58 }
 0x634   : > { %v1585_v61 = vsub.f32 %v4188_v55, %v4193_v59  ;;  %1883 = vst.msk [vmem:[#allocation3 + $0x18] sm:$0xff] %vm1650_vm8, %v4193_v59  ;;  %v1584_v62 = vsub.f32 %v4190_v56, %v4196_v60  ;;  %1882 = vst.msk [vmem:[#allocation3 + $0x10] sm:$0xff] %vm1650_vm8, %v4196_v60  ;;  %1611 = vperm.xlu0 %2867, %v4193_v59   ;;  %1606 = vperm.xlu1 %2868, %v4196_v60   ;;  %v1628_v55 = vld [vmem:[#allocation4 + $0x10] sm:$0xff]  ;;  %v1629_v59 = vld [vmem:[#allocation4 + $0x18] sm:$0xff] }
 0x635   : > { %v1228_v63 = vpop.permute.xlu1 %1227  ;;  %v1225_v4 = vpop.permute.xlu0 %1224 }
 0x636   : > { %v1233_v1 = vcombine.low %v1068_v44, %v1228_v63  ;;  %v1234_v2 = vcombine.high %v1068_v44, %v1228_v63 }
 0x638   : > { %v1241_v10 = vrot.slane %v1233_v1, %v4127_v27  ;;  %v1248_v11 = vrot.slane %v1234_v2, %v4127_v27 }
 0x639   : > { %v1231_v5 = vpop.permute.xlu1 %1230 }
 0x63a   : > { %v4208_v6 = vpop.eup %2873  ;;  %v1249_v7 = vcombine.low %v1225_v4, %v1231_v5  ;;  %v1250_v8 = vcombine.high %v1225_v4, %v1231_v5 }
 0x63b   : > { %v4210_v9 = vpop.eup %2875  ;;  %1666 = vperm.xlu1 %2868, %v4208_v6  }
 0x63c   : > { %v1257_v12 = vrot.slane %v1249_v7, %v4127_v27  ;;  %v1264_v13 = vrot.slane %v1250_v8, %v4127_v27  ;;  %1661 = vperm.xlu0 %2867, %v4210_v9  }
 0x63e   : > { %v1265_v14 = vcombine.low %v1241_v10, %v1257_v12  ;;  %v1266_v15 = vcombine.high %v1241_v10, %v1257_v12  ;;  %v1281_v16 = vcombine.low %v1248_v11, %v1264_v13  ;;  %v1282_v17 = vcombine.high %v1248_v11, %v1264_v13 }
 0x640   : > { %v1273_v18 = vrot.slane %v1265_v14, %v4129_v33  ;;  %v1280_v19 = vrot.slane %v1266_v15, %v4129_v33  ;;  %v1289_v22 = vrot.slane %v1281_v16, %v4129_v33  ;;  %v1296_v23 = vrot.slane %v1282_v17, %v4129_v33 }
 0x642   : > { %v1301_v24 = vcombine.low %v1273_v18, %v1280_v19  ;;  %v2480_v25 = vcombine.high %v1273_v18, %v1280_v19  ;;  %v1317_v26 = vcombine.low %v1289_v22, %v1296_v23  ;;  %v2481_v28 = vcombine.high %v1289_v22, %v1296_v23 }
 0x644   : > { %v1308_v29 = vrot.slane %v1301_v24, %v4127_v27  ;;  %v1316_v30 = vrot.slane %v2480_v25, %v4127_v27  ;;  %v1324_v34 = vrot.slane %v1317_v26, %v4127_v27  ;;  %v1332_v35 = vrot.slane %v2481_v28, %v4127_v27 }
 0x645   : > { %v1590_v24 = vmul.f32 1.442695, %v1584_v62 }
 0x646   : > { %v1333_v36 = vcombine.low %v1308_v29, %v1316_v30  ;;  %v1349_v37 = vcombine.low %v1324_v34, %v1332_v35  ;;  %v1334_v38 = vcombine.high %v1308_v29, %v1316_v30  ;;  %v1350_v39 = vcombine.high %v1324_v34, %v1332_v35  ;;  %v1627_v29 = vld [vmem:[#allocation4 + $0x8] sm:$0xff]  ;;  %v1626_v34 = vld [vmem:[#allocation4] sm:$0xff] }
 0x647   : > { %v1631_v35 = vmul.f32 %v4208_v6, %v1627_v29  ;;  %v1656_v6 = vld [vmem:[#allocation5 + $0x8] sm:$0xff] }
 0x648   : > { %v1341_v40 = vrot.slane %v1333_v36, %v4129_v33  ;;  %v1357_v41 = vrot.slane %v1349_v37, %v4129_v33  ;;  %v1348_v42 = vrot.slane %v1334_v38, %v4129_v33  ;;  %v1364_v43 = vrot.slane %v1350_v39, %v4129_v33 }
 0x649   : > { %v1630_v36 = vmul.f32 %v4210_v9, %v1626_v34  ;;  %v1655_v9 = vld [vmem:[#allocation5] sm:$0xff] }
 0x64a   : > { %v1365_v44 = vcombine.low %v1341_v40, %v1357_v41  ;;  %v1366_v45 = vcombine.high %v1341_v40, %v1357_v41  ;;  %v1367_v46 = vcombine.low %v1348_v42, %v1364_v43  ;;  %v1368_v47 = vcombine.high %v1348_v42, %v1364_v43 }
 0x64c   : > { %v1369_v48 = vpack.c.bf16 %v1365_v44, %v1365_v44  ;;  %v1370_v49 = vpack.c.bf16 %v1366_v45, %v1366_v45  ;;  %v1371_v50 = vpack.c.bf16 %v1367_v46, %v1367_v46  ;;  %v1372_v51 = vpack.c.bf16 %v1368_v47, %v1368_v47 }
 0x64e   : > { %v1692_v52 = vsel %vm1690_vm9, %v1369_v48, 0  ;;  %v1738_v53 = vsel %vm1690_vm9, %v1370_v49, 0  ;;  %v1784_v54 = vsel %vm1690_vm9, %v1371_v50, 0  ;;  %v1830_v57 = vsel %vm1690_vm9, %v1372_v51, 0 }
 0x64f   : > { %2581 = vmatpush3.bf16.msra.mxu0 %v1692_v52  ;;  %2587 = vmatpush3.bf16.msra.mxu1 %v1738_v53 }
 0x650   : > { %2592 = vmatprep.subr.bf16.mxu0 %v3460_v3  ;;  %2598 = vmatprep.subr.bf16.mxu1 %v3460_v3 }
 0x6ab   : > { %v1602_v58 = vpop.permute.xlu1 %1601  ;;  %v1597_v63 = vpop.permute.xlu0 %1596 }
 0x6ac   : > { %v1615_v1 = vsub.f32 %v4169_v21, %v1602_v58  ;;  %v1614_v2 = vsub.f32 %v4167_v20, %v1597_v63  ;;  %v1658_v63 = vld [vmem:[#allocation5 + $0x18] sm:$0xff] }
 0x6ae   : > { %v1620_v4 = vmul.f32 1.442695, %v1615_v1  ;;  %v1618_v5 = vmul.f32 1.442695, %v1614_v2 }
 0x6b0   : > { %2877 = vpow2.f32 %v1620_v4 }
 0x6b1   : > { %2879 = vpow2.f32 %v1618_v5 }
 0x6b3   : > { %v1607_v7 = vpop.permute.xlu1 %1606  ;;  %v1612_v8 = vpop.permute.xlu0 %1611 }
 0x6b4   : > { %v1616_v10 = vsub.f32 %v4175_v31, %v1607_v7  ;;  %v1617_v11 = vsub.f32 %v4177_v32, %v1612_v8 }
 0x6b6   : > { %v1622_v12 = vmul.f32 1.442695, %v1616_v10  ;;  %v1624_v13 = vmul.f32 1.442695, %v1617_v11 }
 0x6b8   : > { %2881 = vpow2.f32 %v1622_v12 }
 0x6b9   : > { %2883 = vpow2.f32 %v1624_v13 }
 0x6ba   : > { %v2878_v14 = vpop.eup %2877  ;;  %2885 = vpow2.f32 %v1590_v24  ;;  %v1667_v30 = vpop.permute.xlu1 %1666  ;;  %v3469_v24 = vmov (!%p2490_p3), 0.0  }
 0x6bb   : > { %v2880_v15 = vpop.eup %2879  ;;  %v1637_v21 = vsel %vm1377_vm7, %v2878_v14, 0.0  ;;  %v1684_v16 = vpack.c.bf16 %v2878_v14, %v2878_v14  ;;  %v1662_v28 = vpop.permute.xlu0 %1661  ;;  %v1680_v43 = vmul.f32 %v1667_v30, %v1656_v6 }
 0x6bc   : > { %1638 = vadd.xlane.f32.xlu0 %v1637_v21  ;;  %v1634_v20 = vsel %vm1377_vm7, %v2880_v15, 0.0  ;;  %v1683_v17 = vpack.c.bf16 %v2880_v15, %v2880_v15  ;;  %v1679_v44 = vmul.f32 %v1662_v28, %v1655_v9 }
 0x6bd   : > { %1635 = vadd.xlane.f32.xlu1 %v1634_v20  ;;  %2589 = vmatmul.mubr.msk.bf16.vlgmr.msra.gmra.mrb[12].mxu1 %vm1377_vm7, %v1684_v16 }
 0x6be   : > { %2583 = vmatmul.mubr.msk.bf16.vlgmr.msra.gmra.mrb[12].mxu0 %vm1377_vm7, %v1683_v17  ;;  %2599 = vmatpush3.bf16.msra.mxu1 %v1830_v57  ;;  %v1657_v57 = vld [vmem:[#allocation5 + $0x10] sm:$0xff] }
 0x6bf   : > { %2593 = vmatpush3.bf16.msra.mxu0 %v1784_v54  ;;  %2594 = vmatprep.mubr.msk.bf16.mxu0 %vm3461_vm5, %v3460_v3 }
 0x6c0   : > { %2600 = vmatprep.mubr.msk.bf16.mxu1 %vm3461_vm5, %v3460_v3  ;;  %v1592_v3 = vmul.f32 1.442695, %v1585_v61  ;;  %2604 = vmatprep.subr.bf16.mxu0 (!%p2490_p3), %v3469_v24 }
 0x6c2   : > { %v2882_v31 = vpop.eup %2881  ;;  %2887 = vpow2.f32 %v1592_v3 }
 0x6c3   : > { %v2884_v32 = vpop.eup %2883  ;;  %v1640_v18 = vsel %vm1377_vm7, %v2882_v31, 0.0  ;;  %v1685_v19 = vpack.c.bf16 %v2882_v31, %v2882_v31  ;;  %v3468_v31 = vmov (!%p2490_p3), 0  }
 0x6c4   : > { %1641 = vadd.xlane.f32.xlu0 %v1640_v18  ;;  %v1643_v22 = vsel %vm1377_vm7, %v2884_v32, 0.0  ;;  %v1686_v23 = vpack.c.bf16 %v2884_v32, %v2884_v32  ;;  %v2886_v25 = vpop.eup %2885 }
 0x6c5   : > { %1644 = vadd.xlane.f32.xlu1 %v1643_v22  ;;  %v1632_v61 = vmul.f32 %v2886_v25, %v1628_v55 }
 0x6c6   : > { %2595 = vmatmul.mubr.msk.bf16.vlgmr.msra.gmra.mrb[16].mxu0 %vm1377_vm7, %v1685_v19  ;;  %2601 = vmatmul.mubr.msk.bf16.vlgmr.msra.gmra.mrb[16].mxu1 %vm1377_vm7, %v1686_v23 }
 0x6c7   : > { %2608 = vmatprep.mubr.msk.bf16.mxu0 (!%p2490_p3), %vm3470_vm10, %v3469_v24 }
 0x6cc   : > { %v2888_v26 = vpop.eup %2887 }
 0x6cd   : > { %v1633_v38 = vmul.f32 %v2888_v26, %v1629_v59 }
 0x6d6   : > { %1671 = vperm.xlu1 %2868, %v2886_v25  }
 0x6da   : > { %1676 = vperm.xlu0 %2867, %v2888_v26   ;;  %2890 = vset.pattern.permute.xlu1 (!%p2490_p3), %v3468_v31 }
 0x6de   : > { %2889 = vset.pattern.permute.xlu0 (!%p2490_p3), %v3468_v31 }
 0x749   : > { %v1639_v56 = vpop.xlane.xlu0 %1638 }
 0x74a   : > { %v1636_v60 = vpop.xlane.xlu1 %1635  ;;  %v1647_v62 = vadd.f32 %v1639_v56, %v1631_v35 }
 0x74b   : > { %v1646_v37 = vadd.f32 %v1636_v60, %v1630_v36 }
 0x74c   : > { %1652 = vst.msk [vmem:[#allocation4 + $0x8] sm:$0xff] %vm1650_vm8, %v1647_v62 }
 0x74d   : > { %1651 = vst.msk [vmem:[#allocation4] sm:$0xff] %vm1650_vm8, %v1646_v37 }
 0x751   : > { %v1642_v39 = vpop.xlane.xlu0 %1641 }
 0x752   : > { %v1645_v40 = vpop.xlane.xlu1 %1644  ;;  %v1648_v41 = vadd.f32 %v1642_v39, %v1632_v61 }
 0x753   : > { %v1649_v42 = vadd.f32 %v1645_v40, %v1633_v38  ;;  %v1893_v32 = vld [vmem:[#allocation4 + $0x8] sm:$0xff] (!%p2490_p3) }
 0x754   : > { %1653 = vst.msk [vmem:[#allocation4 + $0x10] sm:$0xff] %vm1650_vm8, %v1648_v41  ;;  %v1892_v20 = vld [vmem:[#allocation4] sm:$0xff] (!%p2490_p3) }
 0x755   : > { %1654 = vst.msk [vmem:[#allocation4 + $0x18] sm:$0xff] %vm1650_vm8, %v1649_v42  ;;  %v2891_v42 = vld [vmem:[#allocation21] sm:$0xff] (!%p2490_p3)  }
 0x756   : > { %v1672_v58 = vpop.permute.xlu1 %1671  ;;  %2605 = vmatpush3.bf16.msra.mxu0 (!%p2490_p3), %v2891_v42 }
 0x757   : > { %v1681_v2 = vmul.f32 %v1672_v58, %v1657_v57  ;;  %2606 = vmatprep.subr.bf16.mxu0 (!%p2490_p3), %v3469_v24 }
 0x759   : > { %v1677_v1 = vpop.permute.xlu0 %1676 }
 0x75a   : > { %v1682_v4 = vmul.f32 %v1677_v1, %v1658_v63 }
 0x75b   : > { %v1894_v16 = vld [vmem:[#allocation4 + $0x10] sm:$0xff] (!%p2490_p3) }
 0x75c   : > { %v1895_v17 = vld [vmem:[#allocation4 + $0x18] sm:$0xff] (!%p2490_p3)  ;;  %2893 = vrcp.f32 (!%p2490_p3), %v1894_v16 }
 0x75d   : > { %2895 = vrcp.f32 (!%p2490_p3), %v1892_v20 }
 0x75e   : > { %2897 = vrcp.f32 (!%p2490_p3), %v1895_v17 }
 0x75f   : > { %2899 = vrcp.f32 (!%p2490_p3), %v1893_v32  ;;  %v2493_v32 = vld [vmem:[#allocation23] ss:$0 sm:$0xff] (!%p2490_p3) }
 0x766   : > { %v2894_v18 = vpop.eup (!%p2490_p3), %2893 }
 0x767   : > { %v2896_v19 = vpop.eup (!%p2490_p3), %2895  ;;  %1912 = vperm.xlu1 (!%p2490_p3), %2890, %v2894_v18  }
 0x768   : > { %v2898_v22 = vpop.eup (!%p2490_p3), %2897  ;;  %1902 = vperm.xlu0 (!%p2490_p3), %2889, %v2896_v19  }
 0x769   : > { %v2900_v23 = vpop.eup (!%p2490_p3), %2899 }
 0x76b   : > { %1917 = vperm.xlu1 (!%p2490_p3), %2890, %v2898_v22  }
 0x76c   : > { %1907 = vperm.xlu0 (!%p2490_p3), %2889, %v2900_v23  }
 0x790   : > { %v1774_v45 = vpop.f32.mrb[12].mxu1 }
 0x791   : > { %v1728_v46 = vpop.f32.mrb[12].mxu0  ;;  %v1873_v47 = vadd.f32 %v1774_v45, %v1680_v43  ;;  %v2590_v48 = vpop.f32.mrb[13].mxu1 }
 0x792   : > { %v1872_v49 = vadd.f32 %v1728_v46, %v1679_v44  ;;  %v2584_v50 = vpop.f32.mrb[13].mxu0  ;;  %v1777_v51 = vpop.f32.mrb[14].mxu1 }
 0x793   : > { %1877 = vst.msk [vmem:[#allocation5 + $0x8] sm:$0xff] %vm1377_vm7, %v1873_v47  ;;  %v1731_v52 = vpop.f32.mrb[14].mxu0  ;;  %v2591_v53 = vpop.f32.mrb[15].mxu1 }
 0x794   : > { %1876 = vst.msk [vmem:[#allocation5] sm:$0xff] %vm1377_vm7, %v1872_v49  ;;  %v2585_v54 = vpop.f32.mrb[15].mxu0  ;;  %v2892_v49 = vld [vmem:[#allocation21 + $0x8] sm:$0xff] (!%p2490_p3)  }
 0x795   : > { %2607 = vmatpush3.bf16.msra.mxu0 (!%p2490_p3), %v2892_v49 }
 0x796   : > { %1887 = sbr.rel (%p2490_p3) target bundleno = 2700 (0xa8c), region = 132 }
 0x799   : > { %v1820_v5 = vpop.f32.mrb[16].mxu0  ;;  %v1866_v7 = vpop.f32.mrb[16].mxu1 }
 0x79a   : > { %v1874_v8 = vadd.f32 %v1820_v5, %v1681_v2  ;;  %v1875_v10 = vadd.f32 %v1866_v7, %v1682_v4  ;;  %v2596_v11 = vpop.f32.mrb[17].mxu0  ;;  %v2602_v12 = vpop.f32.mrb[17].mxu1  ;;  %v1889_v35 = vld [vmem:[#allocation5 + $0x8] sm:$0xff] (!%p2490_p3) }
 0x79b   : > { %v1823_v13 = vpop.f32.mrb[18].mxu0  ;;  %v1869_v14 = vpop.f32.mrb[18].mxu1  ;;  %v1888_v25 = vld [vmem:[#allocation5] sm:$0xff] (!%p2490_p3) }
 0x79c   : > { %1878 = vst.msk [vmem:[#allocation5 + $0x10] sm:$0xff] %vm1377_vm7, %v1874_v8  ;;  %1879 = vst.msk [vmem:[#allocation5 + $0x18] sm:$0xff] %vm1377_vm7, %v1875_v10  ;;  %v2597_v15 = vpop.f32.mrb[19].mxu0  ;;  %v2603_v21 = vpop.f32.mrb[19].mxu1 }
 0x7a3   : > { %v1890_v3 = vld [vmem:[#allocation5 + $0x10] sm:$0xff]  ;;  %v1891_v34 = vld [vmem:[#allocation5 + $0x18] sm:$0xff] }
 0x7e6   : > { %v1913_v26 = vpop.permute.xlu1 %1912 }
 0x7e7   : > { %v1903_v28 = vpop.permute.xlu0 %1902  ;;  %v1922_v29 = vmul.f32 %v1913_v26, %v1890_v3 }
 0x7e8   : > { %v1920_v30 = vmul.f32 %v1903_v28, %v1888_v25 }
 0x7ea   : > { %v1918_v36 = vpop.permute.xlu1 %1917  ;;  %v1924_v62 = vcombine.low %v1920_v30, %v1922_v29  ;;  %v1925_v37 = vcombine.high %v1920_v30, %v1922_v29 }
 0x7eb   : > { %v1923_v56 = vmul.f32 %v1918_v36, %v1891_v34  ;;  %v1908_v60 = vpop.permute.xlu0 %1907 }
 0x7ec   : > { %v1921_v55 = vmul.f32 %v1908_v60, %v1889_v35  ;;  %v1932_v38 = vrot.slane %v1924_v62, %v4127_v27  ;;  %v1939_v39 = vrot.slane %v1925_v37, %v4127_v27  ;;  %v2497_v62 = vld [vmem:[#allocation24] ss:$0 sm:$0xff] }
 0x7ee   : > { %v1940_v59 = vcombine.low %v1921_v55, %v1923_v56  ;;  %v1941_v61 = vcombine.high %v1921_v55, %v1923_v56 }
 0x7f0   : > { %v1948_v40 = vrot.slane %v1940_v59, %v4127_v27  ;;  %v1955_v41 = vrot.slane %v1941_v61, %v4127_v27 }
 0x7f2   : > { %v1956_v6 = vcombine.low %v1932_v38, %v1948_v40  ;;  %v1957_v9 = vcombine.high %v1932_v38, %v1948_v40  ;;  %v1972_v43 = vcombine.low %v1939_v39, %v1955_v41  ;;  %v1973_v44 = vcombine.high %v1939_v39, %v1955_v41 }
 0x7f4   : > { %v1964_v45 = vrot.slane %v1956_v6, %v4129_v33  ;;  %v1971_v46 = vrot.slane %v1957_v9, %v4129_v33  ;;  %v1980_v47 = vrot.slane %v1972_v43, %v4129_v33  ;;  %v1987_v48 = vrot.slane %v1973_v44, %v4129_v33 }
 0x7f6   : > { %v1992_v50 = vcombine.low %v1964_v45, %v1971_v46  ;;  %v2491_v51 = vcombine.high %v1964_v45, %v1971_v46  ;;  %v2008_v52 = vcombine.low %v1980_v47, %v1987_v48  ;;  %v2492_v53 = vcombine.high %v1980_v47, %v1987_v48 }
 0x7f8   : > { %v1999_v54 = vrot.slane %v1992_v50, %v4127_v27  ;;  %v2007_v57 = vrot.slane %v2491_v51, %v4127_v27  ;;  %v2015_v58 = vrot.slane %v2008_v52, %v4127_v27  ;;  %v2023_v63 = vrot.slane %v2492_v53, %v4127_v27 }
 0x7fa   : > { %v2025_v1 = vcombine.high %v1999_v54, %v2007_v57  ;;  %v2041_v2 = vcombine.high %v2015_v58, %v2023_v63  ;;  %v2024_v4 = vcombine.low %v1999_v54, %v2007_v57  ;;  %v2040_v5 = vcombine.low %v2015_v58, %v2023_v63 }
 0x7fc   : > { %v2039_v7 = vrot.slane %v2025_v1, %v4129_v33  ;;  %v2055_v8 = vrot.slane %v2041_v2, %v4129_v33  ;;  %v2032_v10 = vrot.slane %v2024_v4, %v4129_v33  ;;  %v2048_v11 = vrot.slane %v2040_v5, %v4129_v33 }
 0x7fe   : > { %v2058_v12 = vcombine.low %v2039_v7, %v2055_v8  ;;  %v2057_v13 = vcombine.high %v2032_v10, %v2048_v11  ;;  %v2056_v14 = vcombine.low %v2032_v10, %v2048_v11  ;;  %v2059_v27 = vcombine.high %v2039_v7, %v2055_v8 }
 0x800   : > { %2065 = vrot.lane.b32.xlu1 %v2058_v12, %s3471_s9  ;;  %2061 = vrot.lane.b32.xlu0 %v2057_v13, %s3472_s25 }
 0x804   : > { %2069 = vrot.lane.b32.xlu0 %v2059_v27, %s3473_s30 }
 0x872   : > { %v2062_v15 = vpop.permute.xlu0 %2061  ;;  %v2066_v21 = vpop.permute.xlu1 %2065 }
 0x873   : > { %v2072_v16 = vsel %vm1377_vm7, %v2056_v14, %v2062_v15 }
 0x874   : > { %v2074_v20 = vsel %vm2073_vm11, %v2072_v16, %v2066_v21 }
 0x876   : > { %v2070_v17 = vpop.permute.xlu0 %2069 }
 0x877   : > { %v2076_v31 = vsel %vm2075_vm12, %v2074_v20, %v2070_v17 }
 0x878   : > { %v2077_v33 = vpack.c.bf16 %v2076_v31, %v2076_v31 }
 0x87a   : > { %2609 = vmatmul.mubr.msk.bf16.vlgmr.msra.gmra.mrb[0].mxu0 %vm963_vm6, %v2077_v33 }
 0x94d   : > { %v2138_v18 = vpop.f32.mrb[0].mxu0 }
 0x94e   : > { %v2139_v19 = vadd.f32 %v2493_v32, %v2138_v18  ;;  %v2610_v22 = vpop.f32.mrb[1].mxu0 }
 0x94f   : > { %v2141_v23 = vpop.f32.mrb[2].mxu0 }
 0x950   : > { %v2144_v24 = vadd.f32 %v2139_v19, %v4097_v0  ;;  %v2611_v3 = vpop.f32.mrb[3].mxu0  ;;  %v2498_v0 = vld [vmem:[#allocation26] ss:$0 sm:$0xff] }
 0x952   : > { %v2147_v25 = vsel %vm963_vm6, %v2144_v24, 0.0 }
 0x953   : > { %2148 = vadd.xlane.f32.xlu1 %v2147_v25 }
 0x9e0   : > { %v2149_v26 = vpop.xlane.xlu1 %2148 }
 0x9e1   : > { %v2151_v28 = vmul.f32 0.03125, %v2149_v26 }
 0x9e3   : > { %v2152_v29 = vsub.f32 %v2144_v24, %v2151_v28 }
 0x9e5   : > { %v2153_v30 = vmul.f32 %v2152_v29, %v2152_v29 }
 0x9e7   : > { %v2154_v34 = vsel %vm963_vm6, %v2153_v30, 0.0 }
 0x9e8   : > { %2155 = vadd.xlane.f32.xlu0 %v2154_v34 }
 0xa75   : > { %v2156_v35 = vpop.xlane.xlu0 %2155 }
 0xa76   : > { %v2157_v36 = vmul.f32 0.03125, %v2156_v35 }
 0xa78   : > { %v2158_v56 = vadd.f32 1e-05, %v2157_v36 }
 0xa7a   : > { %2901 = vrsqrt.f32 %v2158_v56 }
 0xa84   : > { %v2902_v60 = vpop.eup %2901 }
 0xa85   : > { %v2160_v37 = vmul.f32 %v2902_v60, %v2152_v29 }
 0xa87   : > { %v2167_v55 = vmul.f32 %v2497_v62, %v2160_v37 }
 0xa89   : > { %v2174_v59 = vadd.f32 %v2498_v0, %v2167_v55 }
 0xa8b   : > { %2175 = vst.msk [vmem:[%s4099_s5] sm:$0xff] %vm963_vm6, %v2174_v59 }
 0xa8c PF: > { %s4513_s15 = sld [smem:[#allocation42_spill]]  ;;  %s4514_s13 = sld [smem:[#allocation41_spill]] }
 0xa8d   : > { %s4515_s22 = sld [smem:[#allocation50_spill]]  ;;  %s2192_s23 = sshll.u32 %s4099_s5, 4  ;;  %s4291_s23 = int_to_ptr.vmem [resolvable:$true] %s2192_s23 }
 0xa8e   : > { %s4516_s26 = sld [smem:[#allocation66_spill]]  ;;  %s2177_s8 = scalar_lea.sflag [#allocation8], %s4059_s4 }
 0xa8f   : > { %s3273_s24 = scalar_lea.vmem %s4291_s23, 128  ;;  %s3474_s14 = smov [#allocation27]  }
 0xa90   : > { %p3274_p6 = scmp.ne.s32.totalorder %s4291_s23, %s3273_s24  ;;  %s3277_s0 = sshll.u32 %s3474_s14, 4  ;;  %s3278_s0 = int_to_ptr.vmem [resolvable:$false] %s3277_s0 }
 0xa91   : > { %s3279_s5 = scalar_lea.vmem %s3278_s0, 256  ;;  %p3280_p5 = scmp.lt.s32.totalorder %s4291_s23, %s3278_s0 }
 0xa92   : > { %s2500_s29 = sshll.u32 %s4513_s15, 1  ;;  %p3281_p8 = scmp.lt.s32.totalorder %s3279_s5, %s3273_s24 }
 0xa93   : > { %s2188_s11 = sadd.s32 %s4514_s13, %s2500_s29  ;;  %p4518_p11 = scmp.ne.s32.totalorder %s4515_s22, 0 }
 0xa94   : > { %s2501_s21 = sshll.u32 %s2188_s11, 7  ;;  %s4517_s3 = smov %s4516_s26 }
 0xa95   : > { %s2190_s18 = scalar_lea.hbm %s4516_s26, %s2501_s21  ;;  %p3275_p9 = pnand %p3274_p6, %p4518_p11 }
 0xa96   : > { %p3282_p1 = por %p3281_p8, %p3280_p5 }
 0xa97   : > { %p3276_p2 = pneg %p3275_p9 }
 0xa99   : > { %p3283_p12 = pnand %p3282_p1, %p3276_p2 }
 0xa9b   : > { %3286 = shalt.err (!%p3283_p12)
}
 0xa9c   : > { %s3287_s6 = scalar_lea.hbm %s2190_s18, 128  ;;  %s3291_s25 = scalar_lea.hbm %s4517_s3, 512 }
 0xa9d   : > { %p3288_p4 = scmp.ne.s32.totalorder %s2190_s18, %s3287_s6  ;;  %p3292_p10 = scmp.lt.u32.totalorder %s2190_s18, %s4517_s3 }
 0xa9e   : > { %p3293_p0 = scmp.lt.u32.totalorder %s3291_s25, %s3287_s6  ;;  %p3295_p6 = scmp.lt.u32.totalorder %s3287_s6, %s2190_s18 }
 0xa9f   : > { %p3289_p13 = pnand %p3288_p4, %p4518_p11 }
 0xaa0   : > { %p3294_p3 = por %p3293_p0, %p3292_p10 }
 0xaa1   : > { %p3290_p7 = pneg %p3289_p13 }
 0xaa2   : > { %p3296_p9 = por %p3295_p6, %p3294_p3 }
 0xaa4   : > { %p3297_p2 = pnand %p3296_p9, %p3290_p7 }
 0xaa6   : > { %3300 = shalt.err (!%p3297_p2)
}
 0xaa7   : > { %2658 = dma.vmem_to_hbm [thread:$0]  (%p4518_p11), %s4291_s23, 128, %s2190_s18, %s2177_s8  }
 0xaa8 PF: > { %s4519_s13 = sld [smem:[#allocation37_spill]]  ;;  %s4520_s29 = sld [smem:[#allocation52_spill]] }
 0xaa9   : > { %p2726_p5 = scmp.ge.s32.totalorder %s3435_s20, 2 }
 0xaae   : > { %s2204_s11 = sand.u32 1, %s4519_s13   ;;  %p4521_p8 = scmp.ne.s32.totalorder %s4520_s29, 0 }
 0xaaf   : > { %s2205_s21 = scalar_lea.sflag [#allocation8], %s2204_s11 }
 0xab0   : > { %p2702_p1 = pnand %p2726_p5, %p4521_p8 }
 0xab2   : > { %3382 = dma.done.wait (!%p2702_p1), %s2205_s21, 128  }
 0xab3   : > { %3384 = vsyncadd (!%p2702_p1), %s2205_s21, 4294967168  ;;  %s37_s20 = sadd.s32 1, %s3435_s20   ;;  %s4523_s25 = sld [smem:[#allocation36_spill]] }
 0xab4   : > { %p4318_p12 = scmp.ge.s32.totalorder %s37_s20, 10   ;;  %s4524_s22 = sld [smem:[#allocation38_spill]] }
 0xab5   : > { %s4525_s29 = sld [smem:[#allocation39_spill]]  ;;  %s4526_s23 = smov %s4549_s28 }
 0xab6   : > { %s4527_s15 = sld [smem:[#allocation43_spill]]  ;;  %s4528_s18 = sld [smem:[#allocation48_spill]] }
 0xab7   : > { %s4529_s8 = sld [smem:[#allocation51_spill]]  ;;  %s4530_s26 = smov %s3395_s27 }
 0xab8   : > { %s4531_s27 = smov %s3980_s10  ;;  %s4533_s30 = smov %s4526_s23 }
 0xab9   : > { %s4534_s14 = smov %s3423_s17  ;;  %s4535_s16 = smov %s3431_s19 }
 0xaba   : > { %s4532_s28 = smov %s4524_s22  ;;  %s4536_s17 = smov %s4539_s2 }
 0xabb   :  { %36 = sbr.rel (!%p4318_p12) target bundleno = 32 (0x20), region = 189 }
 0xabd   : > { %s4537_s19 = smov %s4529_s8 }
 0xac2   :  { %2210 = vsyncpa [#allocation7], 1 }
 0xac3   :  { %2212 = vsyncpa [#allocation7 + $0x1], 1 }
 0xac4   :  { %2213 = vsyncpa [#allocation10], 1 }
 0xac5   :  { %2215 = vsyncpa [#allocation10 + $0x1], 1 }
 0xac6   :  { %2216 = vsyncpa [#allocation13], 1 }
 0xac7   :  { %2217 = vsyncpa [#allocation16], 1 }
 0xac8   :  { %2218 = vsyncpa [#allocation19], 1 }
 0xac9   :  { %2219 = vsyncpa [#allocation22], 1 }
 0xaca   :  { %2220 = vsyncpa [#allocation25], 1 }
 0xacb   :  { %2221 = vsyncpa [#allocation8], 1 }
 0xacc   :  { %2223 = vsyncpa [#allocation8 + $0x1], 1 }

</bundles_post_ra>
